<compile_context>
chip_gen: v6e
topology: v6e:2x2x1
jax: 0.10.0
libtpu: 0.0.40
codegen_flags: <defaults>
</compile_context>

<pallas_src>
import jax
import jax.numpy as jnp
from jax.experimental import pallas as pl
from jax.experimental.pallas import tpu as pltpu


# ----------------------------------------------------------------------------
# Fused per-layer EGNN kernel (one grid step == one batch element, all S samples)
# ----------------------------------------------------------------------------
def _gnn_layer_kernel(
        xh_ref, hfeat_ref, xv_ref, hvfeat_ref,
        roh_ref, rohT_ref, cohh_ref, cohv_ref, bond_ref, mask_ref, t_ref,
        wfused_ref, we1c_ref, we1s_ref, be1_ref,
        we2_ref, be2_ref, wx1_ref, bx1_ref, wx2_ref, bx2_ref,
        wh1b_ref, bh1_ref, wh2_ref, bh2_ref,
        xout_ref, hout_ref):
    f32, bf16 = jnp.float32, jnp.bfloat16
    S, num_h = xh_ref.shape[1], xh_ref.shape[2]
    feat = hfeat_ref.shape[3]
    E = roh_ref.shape[1]
    H = we2_ref.shape[0]

    xh = xh_ref[0]                       # [S, num_h, 3]       f32
    hfeat = hfeat_ref[0]                 # [S, num_h, feat]    f32
    xv = xv_ref[0]                       # [num_heavy, 3]      f32
    hv = hvfeat_ref[0]                   # [num_heavy, feat]   f32
    roh = roh_ref[0]                     # [E, num_h]          bf16 one-hot
    rohT = rohT_ref[0]                   # [num_h, E]          bf16 one-hot
    coh_h = cohh_ref[0]                  # [E, num_h]          bf16 one-hot
    coh_v = cohv_ref[0]                  # [E, num_heavy]      bf16 one-hot
    bond = bond_ref[0]                   # [E, 1]              f32
    msk = jnp.broadcast_to(mask_ref[0], (S, E, 1)).astype(f32)   # [S, E, 1]
    tv = t_ref[pl.program_id(0), 0]      # scalar (SMEM)
    bx2 = bx2_ref[0, 0]                  # scalar (SMEM)

    # one-hots broadcast across samples for batched-matmul gathers / scatters
    roh_b = jnp.broadcast_to(roh[None], (S, E, num_h))
    cohh_b = jnp.broadcast_to(coh_h[None], (S, E, num_h))
    rohT_b = jnp.broadcast_to(rohT[None], (S, num_h, E))

    # ---- per-edge geometry (exact f32 one-hot matmul gathers) ----------------
    x_col_v = jnp.dot(coh_v.astype(f32), xv, preferred_element_type=f32)    # [E, 3]
    x_row = jnp.einsum('sen,snd->sed', roh_b.astype(f32), xh,
                       preferred_element_type=f32)                          # [S, E, 3]
    x_col_h = jnp.einsum('sen,snd->sed', cohh_b.astype(f32), xh,
                         preferred_element_type=f32)
    diff = x_row - (x_col_h + x_col_v[None])                                # [S, E, 3]
    # forward-safe at 0; TODO(synk): add eps inside sqrt if ever differentiated
    dist = jnp.sqrt(jnp.sum(diff * diff, axis=-1, keepdims=True))           # [S, E, 1]

    # ---- fused hydrogen-feature projection: [We1r | We1c | Wh1a] ------------
    hfeat_flat = hfeat.reshape(S * num_h, feat)
    pre = jnp.dot(hfeat_flat.astype(bf16), wfused_ref[...],
                  preferred_element_type=f32)                               # [S*num_h, 3H]
    pre_r = pre[:, 0:H].astype(bf16).reshape(S, num_h, H)
    pre_c = pre[:, H:2 * H].astype(bf16).reshape(S, num_h, H)
    n1a = pre[:, 2 * H:3 * H]                                               # [S*num_h, H] f32
    pre_v = jnp.dot(hv.astype(bf16), we1c_ref[...],
                    preferred_element_type=f32)                             # [num_heavy, H]

    # ---- edge MLP layer 1 (gathers fused into matmuls) -----------------------
    ws = we1s_ref[...]                                                      # [3, H] (dist,bond,t)
    m1 = (jnp.einsum('sen,snk->sek', roh_b, pre_r, preferred_element_type=f32)
          + jnp.einsum('sen,snk->sek', cohh_b, pre_c, preferred_element_type=f32)
          + jnp.dot(coh_v, pre_v.astype(bf16), preferred_element_type=f32)[None]
          + dist * ws[0:1, :] + bond[None] * ws[1:2, :] + tv * ws[2:3, :]
          + be1_ref[...])                                                   # [S, E, H]
    m1 = m1.reshape(S * E, H)
    m1 = m1 * jax.nn.sigmoid(m1)                                            # SiLU

    m2 = (jnp.dot(m1.astype(bf16), we2_ref[...], preferred_element_type=f32)
          + be2_ref[...])
    m2 = m2 * jax.nn.sigmoid(m2)                                            # [S*E, H]

    # ---- coordinate-weight head ----------------------------------------------
    wc = (jnp.dot(m2.astype(bf16), wx1_ref[...], preferred_element_type=f32)
          + bx1_ref[...])
    wc = wc * jax.nn.sigmoid(wc)
    wct = jnp.sum(wc * wx2_ref[...], axis=-1, keepdims=True) + bx2          # [S*E, 1]

    # ---- masked edge -> node aggregation --------------------------------------
    msk_flat = msk.reshape(S * E, 1)
    mm = (m2 * msk_flat).reshape(S, E, H)                                    # [S, E, H]
    dw = diff * (wct.reshape(S, E, 1) * msk)                                 # [S, E, 3]
    aggm = jnp.einsum('sne,sek->snk', rohT_b, mm.astype(bf16),
                      preferred_element_type=f32)                            # [S, num_h, H]
    x_upd = jnp.einsum('sne,sed->snd', rohT_b.astype(f32), dw,
                       preferred_element_type=f32)                           # [S, num_h, 3]

    # ---- node MLP, residuals written in place ---------------------------------
    n1 = (n1a
          + jnp.dot(aggm.reshape(S * num_h, H).astype(bf16), wh1b_ref[...],
                    preferred_element_type=f32)
          + bh1_ref[...])
    n1 = n1 * jax.nn.sigmoid(n1)
    dh = (jnp.dot(n1.astype(bf16), wh2_ref[...], preferred_element_type=f32)
          + bh2_ref[...])                                                    # [S*num_h, feat]

    hout_ref[0] = hfeat + dh.reshape(S, num_h, feat)
    xout_ref[0] = xh + x_upd


def gnn_layer_pallas(xh, hfeat, x_heavy, heavy_feat, roh, rohT, coh_h, coh_v,
                     bond_e, edge_mask, t_arr, lp):
    B, S, num_h, _ = xh.shape
    feat = hfeat.shape[-1]
    num_heavy = x_heavy.shape[1]
    E = roh.shape[1]
    H = lp["We2"].shape[0]
    S_m = edge_mask.shape[1]

    b4 = lambda b: (b, 0, 0, 0)
    b3 = lambda b: (b, 0, 0)
    w2 = lambda b: (0, 0)
    smem = pl.BlockSpec(memory_space=pltpu.MemorySpace.SMEM)

    x_new, h_new = pl.pallas_call(
        _gnn_layer_kernel,
        out_shape=(jax.ShapeDtypeStruct((B, S, num_h, 3), jnp.float32),
                   jax.ShapeDtypeStruct((B, S, num_h, feat), jnp.float32)),
        grid=(B,),
        in_specs=[
            pl.BlockSpec((1, S, num_h, 3), b4),          # hydrogen coords
            pl.BlockSpec((1, S, num_h, feat), b4),       # hydrogen features
            pl.BlockSpec((1, num_heavy, 3), b3),         # heavy coords (S-shared)
            pl.BlockSpec((1, num_heavy, feat), b3),      # heavy features (const)
            pl.BlockSpec((1, E, num_h), b3),             # row one-hot
            pl.BlockSpec((1, num_h, E), b3),             # row one-hot, transposed
            pl.BlockSpec((1, E, num_h), b3),             # col one-hot (hydrogen part)
            pl.BlockSpec((1, E, num_heavy), b3),         # col one-hot (heavy part)
            pl.BlockSpec((1, E, 1), b3),                 # bond feature per edge
            pl.BlockSpec((1, S_m, E, 1), b4),            # edge mask
            smem,                                        # t table   (B, 1) in SMEM
            pl.BlockSpec((feat, 3 * H), w2),             # [We1r | We1c | Wh1a]
            pl.BlockSpec((feat, H), w2),                 # We1c (heavy features)
            pl.BlockSpec((3, H), w2),                    # dist / bond / t rows of We1
            pl.BlockSpec((1, H), w2),                    # be1
            pl.BlockSpec((H, H), w2),                    # We2
            pl.BlockSpec((1, H), w2),                    # be2
            pl.BlockSpec((H, H), w2),                    # Wx1
            pl.BlockSpec((1, H), w2),                    # bx1
            pl.BlockSpec((1, H), w2),                    # Wx2 (row vector)
            smem,                                        # bx2 scalar in SMEM
            pl.BlockSpec((H, H), w2),                    # Wh1b
            pl.BlockSpec((1, H), w2),                    # bh1
            pl.BlockSpec((H, feat), w2),                 # Wh2
            pl.BlockSpec((1, feat), w2),                 # bh2
        ],
        out_specs=(pl.BlockSpec((1, S, num_h, 3), b4),
                   pl.BlockSpec((1, S, num_h, feat), b4)),
        input_output_aliases={0: 0, 1: 1},
        compiler_params=pltpu.CompilerParams(
            dimension_semantics=("parallel",)),
    )(xh, hfeat, x_heavy, heavy_feat, roh, rohT, coh_h, coh_v,
      bond_e, edge_mask, t_arr,
      lp["Wfused"], lp["We1c"], lp["we1s"], lp["be1"],
      lp["We2"], lp["be2"], lp["Wx1"], lp["bx1"], lp["Wx2"], lp["bx2"],
      lp["Wh1b"], lp["bh1"], lp["Wh2"], lp["bh2"])
    return x_new, h_new


# ----------------------------------------------------------------------------
# Glue: edge index construction (reconstructed get_extra_edge_indices)
# ----------------------------------------------------------------------------
def get_extra_edge_indices(edges_h_h, num_h, num_heavy, batch):
    hh_row = edges_h_h[..., 0]
    hh_col = edges_h_h[..., 1]
    hv_row = jnp.repeat(jnp.arange(num_h, dtype=jnp.int32), num_heavy)
    hv_col = num_h + jnp.tile(jnp.arange(num_heavy, dtype=jnp.int32), num_h)
    hv_row = jnp.broadcast_to(hv_row[None, :], (batch, hv_row.shape[0]))
    hv_col = jnp.broadcast_to(hv_col[None, :], (batch, hv_col.shape[0]))
    edge_row = jnp.concatenate([hh_row, hv_row], axis=1)
    edge_col = jnp.concatenate([hh_col, hv_col], axis=1)
    return edge_row, edge_col


def _one_hot(x, n):
    return jax.nn.one_hot(x, n, dtype=jnp.float32)


# ----------------------------------------------------------------------------
# DynamicsHydrogen forward
# ----------------------------------------------------------------------------
def dynamics_hydrogen_forward(params, t, x_h, features):
    x_heavy = features["coordinates_heavy_h"]
    peptide_seq = features["fragment_seq"]
    atom_labels_heavy = features["atoms_heavy"]
    atom_labels_h = features["atoms_h"]
    amino_acid_pos_heavy = features["amino_acid_pos_heavy"]
    amino_acid_pos_h = features["amino_acid_pos_h"]
    bond_matrix_h_heavy = features["bond_matrix_h_heavy"]
    edges_h_h = features["edges_h_h"]
    edge_mask_h_heavy = features["edge_mask_h_heavy"]
    edge_mask_h_h = features["edge_mask_h_h"]
    atom_mask = features["atom_mask_h"]
    bound_atom = features["bound_atom"]

    B, S, num_h = x_h.shape[0], x_h.shape[1], x_h.shape[2]
    num_heavy = x_heavy.shape[2]

    # TODO(synk): per-sample heavy coordinates (x_heavy.shape[1]==S with distinct
    # values per sample) are not folded; the original repeat path is S-identical.
    x_heavy_b = x_heavy[:, 0]                                   # [B, num_heavy, 3]

    # ---- single-atom embeddings ----------------------------------------------
    atom_oh_heavy = _one_hot(atom_labels_heavy, 44)
    aa_heavy = jnp.take_along_axis(peptide_seq, amino_acid_pos_heavy - 1, axis=1)
    aa_oh_heavy = _one_hot(aa_heavy, 20)
    pos_oh_heavy = _one_hot(amino_acid_pos_heavy - 1, 15)
    embedding_heavy = jnp.concatenate([atom_oh_heavy, aa_oh_heavy, pos_oh_heavy], -1)

    atom_oh_h = _one_hot(atom_labels_h, 44)
    aa_h = jnp.take_along_axis(peptide_seq, amino_acid_pos_h - 1, axis=1)
    aa_oh_h = _one_hot(aa_h, 20)
    pos_oh_h = _one_hot(amino_acid_pos_h - 1, 15)
    embedding_h = jnp.concatenate([atom_oh_h, aa_oh_h, pos_oh_h], -1)
    feat = embedding_h.shape[-1]

    # ---- absolute hydrogen coordinates ----------------------------------------
    heavy_at_bound = jax.vmap(lambda xv, ba: xv[ba])(x_heavy_b, bound_atom)  # [B,num_h,3]
    x_h_abs = x_h + heavy_at_bound[:, None]                                  # [B,S,num_h,3]
    x_h0 = x_h_abs

    # ---- per-forward constants: edges, one-hots, bond, mask, t ----------------
    bond_matrix = jnp.concatenate(
        [jnp.zeros((B, num_h, num_h), jnp.float32), bond_matrix_h_heavy], axis=-1)

    edge_row, edge_col = get_extra_edge_indices(edges_h_h, num_h, num_heavy, B)
    E = edge_row.shape[1]

    roh = jax.nn.one_hot(edge_row, num_h, dtype=jnp.bfloat16)                # [B,E,num_h]
    rohT = jnp.transpose(roh, (0, 2, 1))                                     # [B,num_h,E]
    coh_h = jax.nn.one_hot(edge_col, num_h, dtype=jnp.bfloat16)              # zero rows for heavy
    coh_v = jax.nn.one_hot(edge_col - num_h, num_heavy, dtype=jnp.bfloat16)  # zero rows for hydrogen
    bond_e = jax.vmap(lambda bm, r, c: bm[r, c])(
        bond_matrix, edge_row, edge_col)[..., None]                          # [B,E,1]

    if edge_mask_h_heavy.ndim < 4:
        edge_mask = jnp.concatenate(
            [edge_mask_h_h, edge_mask_h_heavy.reshape(B, -1)], axis=-1)
    else:
        edge_mask = jnp.concatenate(
            [jnp.repeat(edge_mask_h_h[:, None, :], edge_mask_h_heavy.shape[1], 1),
             edge_mask_h_heavy.reshape(B, edge_mask_h_heavy.shape[1], -1)], axis=-1)
    if edge_mask.ndim < 3:
        edge_mask = edge_mask[:, None, :]
    edge_mask = edge_mask.astype(jnp.float32)[..., None]                     # [B,S_m,E,1]

    t_arr = jnp.broadcast_to(
        jnp.asarray(t, jnp.float32).reshape(-1), (B,)).reshape(B, 1)

    # initial per-sample hydrogen features (small: num_h * feat per sample)
    hfeat = jnp.broadcast_to(embedding_h[:, None], (B, S, num_h, feat))
    xh_cur = x_h_abs
    hfeat_cur = hfeat

    # ---- layer loop: one fused Pallas kernel per layer, in-place slabs --------
    for lp in params["layers"]:
        xh_cur, hfeat_cur = gnn_layer_pallas(
            xh_cur, hfeat_cur, x_heavy_b, embedding_heavy,
            roh, rohT, coh_h, coh_v, bond_e, edge_mask, t_arr, lp)

    prediction = (xh_cur - x_h0) * atom_mask[:, None, :, :]
    return prediction


# ----------------------------------------------------------------------------
# Deterministic parameter construction
# ----------------------------------------------------------------------------
def init_params(num_layers=2, hidden=32, feat=79):
    key = jax.random.PRNGKey(42)
    layers = []
    for _ in range(num_layers):
        keys = jax.random.split(key, 7)
        key = keys[0]

        def lin(k, fi, fo):
            return jax.random.normal(k, (fi, fo), jnp.float32) / jnp.sqrt(fi)

        We1 = lin(keys[1], 2 * feat + 3, hidden)   # rows: [h_row | h_col | dist,bond,t]
        We2 = lin(keys[2], hidden, hidden)
        Wx1 = lin(keys[3], hidden, hidden)
        Wx2 = lin(keys[4], hidden, 1)
        Wh1 = lin(keys[5], feat + hidden, hidden)  # rows: [h | agg]
        Wh2 = lin(keys[6], hidden, feat)
        layers.append(dict(
            Wfused=jnp.concatenate(
                [We1[:feat], We1[feat:2 * feat], Wh1[:feat]],
                axis=1).astype(jnp.bfloat16),          # [feat, 3H]
            We1c=We1[feat:2 * feat].astype(jnp.bfloat16),
            we1s=We1[2 * feat:],                       # [3, H] f32 (dist, bond, t)
            be1=jnp.zeros((1, hidden), jnp.float32),
            We2=We2.astype(jnp.bfloat16),
            be2=jnp.zeros((1, hidden), jnp.float32),
            Wx1=Wx1.astype(jnp.bfloat16),
            bx1=jnp.zeros((1, hidden), jnp.float32),
            Wx2=Wx2.reshape(1, hidden),                # row vector, f32 (VPU)
            bx2=jnp.zeros((1, 1), jnp.float32),
            Wh1b=Wh1[feat:].astype(jnp.bfloat16),
            bh1=jnp.zeros((1, hidden), jnp.float32),
            Wh2=Wh2.astype(jnp.bfloat16),
            bh2=jnp.zeros((1, feat), jnp.float32)))
    return {"layers": layers}


if __name__ == "__main__":
    B, S, num_h, num_heavy, seq_len = 2, 2, 4, 8, 5
    key = jax.random.PRNGKey(0)
    ks = jax.random.split(key, 12)

    x_h = jax.random.normal(ks[0], (B, S, num_h, 3), jnp.float32) * 0.1
    features = {
        "coordinates_heavy_h": jax.random.normal(ks[1], (B, 1, num_heavy, 3),
                                                 jnp.float32),
        "fragment_seq": jax.random.randint(ks[2], (B, seq_len), 0, 20, jnp.int32),
        "atoms_heavy": jax.random.randint(ks[3], (B, num_heavy), 0, 44, jnp.int32),
        "atoms_h": jax.random.randint(ks[4], (B, num_h), 0, 44, jnp.int32),
        "amino_acid_pos_heavy": jax.random.randint(ks[5], (B, num_heavy), 1,
                                                   seq_len + 1, jnp.int32),
        "amino_acid_pos_h": jax.random.randint(ks[6], (B, num_h), 1,
                                               seq_len + 1, jnp.int32),
        "bond_matrix_h_heavy": jax.random.bernoulli(
            ks[7], 0.3, (B, num_h, num_heavy)).astype(jnp.float32),
        "edges_h_h": jnp.broadcast_to(
            jnp.stack([jnp.repeat(jnp.arange(num_h, dtype=jnp.int32), num_h),
                       jnp.tile(jnp.arange(num_h, dtype=jnp.int32), num_h)],
                      axis=-1)[None], (B, num_h * num_h, 2)),
        "edge_mask_h_heavy": jnp.ones((B, num_h, num_heavy), jnp.float32),
        "edge_mask_h_h": jnp.broadcast_to(
            (jnp.repeat(jnp.arange(num_h), num_h)
             != jnp.tile(jnp.arange(num_h), num_h)).astype(jnp.float32)[None],
            (B, num_h * num_h)),
        "atom_mask_h": jnp.ones((B, num_h, 1), jnp.float32),
        "bound_atom": jax.random.randint(ks[8], (B, num_h), 0, num_heavy, jnp.int32),
    }

    params = init_params(num_layers=2, hidden=32, feat=79)
    t = jnp.full((B,), 0.5, jnp.float32)

    fwd = jax.jit(dynamics_hydrogen_forward)
    pred = fwd(params, t, x_h, features)
    jax.block_until_ready(pred)
    assert pred.shape == (B, S, num_h, 3)
    assert bool(jnp.all(jnp.isfinite(pred)))
    print("KERNEL_OK")
</pallas_src>

<mosaic_0001>
module attributes {stable_mosaic.version = 11 : i64} {
  func.func @_gnn_layer_kernel(%arg0: i32, %arg1: memref<1x2x4x3xf32, #tpu.memory_space<vmem>>, %arg2: memref<1x2x4x79xf32, #tpu.memory_space<vmem>>, %arg3: memref<1x8x3xf32, #tpu.memory_space<vmem>>, %arg4: memref<1x8x79xf32, #tpu.memory_space<vmem>>, %arg5: memref<1x48x4xbf16, #tpu.memory_space<vmem>>, %arg6: memref<1x4x48xbf16, #tpu.memory_space<vmem>>, %arg7: memref<1x48x4xbf16, #tpu.memory_space<vmem>>, %arg8: memref<1x48x8xbf16, #tpu.memory_space<vmem>>, %arg9: memref<1x48x1xf32, #tpu.memory_space<vmem>>, %arg10: memref<1x1x48x1xf32, #tpu.memory_space<vmem>>, %arg11: memref<2x1xf32, #tpu.memory_space<smem>>, %arg12: memref<79x96xbf16, #tpu.memory_space<vmem>>, %arg13: memref<79x32xbf16, #tpu.memory_space<vmem>>, %arg14: memref<3x32xf32, #tpu.memory_space<vmem>>, %arg15: memref<1x32xf32, #tpu.memory_space<vmem>>, %arg16: memref<32x32xbf16, #tpu.memory_space<vmem>>, %arg17: memref<1x32xf32, #tpu.memory_space<vmem>>, %arg18: memref<32x32xbf16, #tpu.memory_space<vmem>>, %arg19: memref<1x32xf32, #tpu.memory_space<vmem>>, %arg20: memref<1x32xf32, #tpu.memory_space<vmem>>, %arg21: memref<1x1xf32, #tpu.memory_space<smem>>, %arg22: memref<32x32xbf16, #tpu.memory_space<vmem>>, %arg23: memref<1x32xf32, #tpu.memory_space<vmem>>, %arg24: memref<32x79xbf16, #tpu.memory_space<vmem>>, %arg25: memref<1x79xf32, #tpu.memory_space<vmem>>, %arg26: memref<1x2x4x3xf32, #tpu.memory_space<vmem>>, %arg27: memref<1x2x4x79xf32, #tpu.memory_space<vmem>>) attributes {dimension_semantics = [#tpu.dimension_semantics<parallel>], iteration_bounds = array<i64: 2>, scalar_prefetch = 0 : i64, scratch_operands = 0 : i64, tpu.core_type = #tpu.core_type<tc>, window_params = [{transform_indices = @transform_0, window_bounds = array<i64: 1, 2, 4, 3>}, {transform_indices = @transform_1, window_bounds = array<i64: 1, 2, 4, 79>}, {transform_indices = @transform_2, window_bounds = array<i64: 1, 8, 3>}, {transform_indices = @transform_3, window_bounds = array<i64: 1, 8, 79>}, {transform_indices = @transform_4, window_bounds = array<i64: 1, 48, 4>}, {transform_indices = @transform_5, window_bounds = array<i64: 1, 4, 48>}, {transform_indices = @transform_6, window_bounds = array<i64: 1, 48, 4>}, {transform_indices = @transform_7, window_bounds = array<i64: 1, 48, 8>}, {transform_indices = @transform_8, window_bounds = array<i64: 1, 48, 1>}, {transform_indices = @transform_9, window_bounds = array<i64: 1, 1, 48, 1>}, {transform_indices = @transform_10, window_bounds = array<i64: 2, 1>}, {pipeline_mode = #tpu.pipeline_mode<synchronous>, transform_indices = @transform_11, window_bounds = array<i64: 79, 96>}, {pipeline_mode = #tpu.pipeline_mode<synchronous>, transform_indices = @transform_12, window_bounds = array<i64: 79, 32>}, {pipeline_mode = #tpu.pipeline_mode<synchronous>, transform_indices = @transform_13, window_bounds = array<i64: 3, 32>}, {pipeline_mode = #tpu.pipeline_mode<synchronous>, transform_indices = @transform_14, window_bounds = array<i64: 1, 32>}, {pipeline_mode = #tpu.pipeline_mode<synchronous>, transform_indices = @transform_15, window_bounds = array<i64: 32, 32>}, {pipeline_mode = #tpu.pipeline_mode<synchronous>, transform_indices = @transform_16, window_bounds = array<i64: 1, 32>}, {pipeline_mode = #tpu.pipeline_mode<synchronous>, transform_indices = @transform_17, window_bounds = array<i64: 32, 32>}, {pipeline_mode = #tpu.pipeline_mode<synchronous>, transform_indices = @transform_18, window_bounds = array<i64: 1, 32>}, {pipeline_mode = #tpu.pipeline_mode<synchronous>, transform_indices = @transform_19, window_bounds = array<i64: 1, 32>}, {transform_indices = @transform_20, window_bounds = array<i64: 1, 1>}, {pipeline_mode = #tpu.pipeline_mode<synchronous>, transform_indices = @transform_21, window_bounds = array<i64: 32, 32>}, {pipeline_mode = #tpu.pipeline_mode<synchronous>, transform_indices = @transform_22, window_bounds = array<i64: 1, 32>}, {pipeline_mode = #tpu.pipeline_mode<synchronous>, transform_indices = @transform_23, window_bounds = array<i64: 32, 79>}, {pipeline_mode = #tpu.pipeline_mode<synchronous>, transform_indices = @transform_24, window_bounds = array<i64: 1, 79>}, {transform_indices = @transform_25, window_bounds = array<i64: 1, 2, 4, 3>}, {transform_indices = @transform_26, window_bounds = array<i64: 1, 2, 4, 79>}]} {
    %c0 = arith.constant 0 : index
    %c0_0 = arith.constant 0 : index
    %c0_1 = arith.constant 0 : index
    %c0_2 = arith.constant 0 : index
    %0 = vector.load %arg1[%c0, %c0_0, %c0_1, %c0_2] : memref<1x2x4x3xf32, #tpu.memory_space<vmem>>, vector<1x2x4x3xf32>
    %1 = vector.shape_cast %0 : vector<1x2x4x3xf32> to vector<2x4x3xf32>
    %c0_3 = arith.constant 0 : index
    %c0_4 = arith.constant 0 : index
    %c0_5 = arith.constant 0 : index
    %c0_6 = arith.constant 0 : index
    %2 = vector.load %arg2[%c0_3, %c0_4, %c0_5, %c0_6] : memref<1x2x4x79xf32, #tpu.memory_space<vmem>>, vector<1x2x4x79xf32>
    %3 = vector.shape_cast %2 : vector<1x2x4x79xf32> to vector<2x4x79xf32>
    %c0_7 = arith.constant 0 : index
    %c0_8 = arith.constant 0 : index
    %c0_9 = arith.constant 0 : index
    %4 = vector.load %arg3[%c0_7, %c0_8, %c0_9] : memref<1x8x3xf32, #tpu.memory_space<vmem>>, vector<1x8x3xf32>
    %5 = vector.shape_cast %4 : vector<1x8x3xf32> to vector<8x3xf32>
    %c0_10 = arith.constant 0 : index
    %c0_11 = arith.constant 0 : index
    %c0_12 = arith.constant 0 : index
    %6 = vector.load %arg4[%c0_10, %c0_11, %c0_12] : memref<1x8x79xf32, #tpu.memory_space<vmem>>, vector<1x8x79xf32>
    %7 = vector.shape_cast %6 : vector<1x8x79xf32> to vector<8x79xf32>
    %c0_13 = arith.constant 0 : index
    %c0_14 = arith.constant 0 : index
    %c0_15 = arith.constant 0 : index
    %8 = vector.load %arg5[%c0_13, %c0_14, %c0_15] : memref<1x48x4xbf16, #tpu.memory_space<vmem>>, vector<1x48x4xbf16>
    %9 = vector.shape_cast %8 : vector<1x48x4xbf16> to vector<48x4xbf16>
    %c0_16 = arith.constant 0 : index
    %c0_17 = arith.constant 0 : index
    %c0_18 = arith.constant 0 : index
    %10 = vector.load %arg6[%c0_16, %c0_17, %c0_18] : memref<1x4x48xbf16, #tpu.memory_space<vmem>>, vector<1x4x48xbf16>
    %11 = vector.shape_cast %10 : vector<1x4x48xbf16> to vector<4x48xbf16>
    %c0_19 = arith.constant 0 : index
    %c0_20 = arith.constant 0 : index
    %c0_21 = arith.constant 0 : index
    %12 = vector.load %arg7[%c0_19, %c0_20, %c0_21] : memref<1x48x4xbf16, #tpu.memory_space<vmem>>, vector<1x48x4xbf16>
    %13 = vector.shape_cast %12 : vector<1x48x4xbf16> to vector<48x4xbf16>
    %c0_22 = arith.constant 0 : index
    %c0_23 = arith.constant 0 : index
    %c0_24 = arith.constant 0 : index
    %14 = vector.load %arg8[%c0_22, %c0_23, %c0_24] : memref<1x48x8xbf16, #tpu.memory_space<vmem>>, vector<1x48x8xbf16>
    %15 = vector.shape_cast %14 : vector<1x48x8xbf16> to vector<48x8xbf16>
    %c0_25 = arith.constant 0 : index
    %c0_26 = arith.constant 0 : index
    %c0_27 = arith.constant 0 : index
    %16 = vector.load %arg9[%c0_25, %c0_26, %c0_27] : memref<1x48x1xf32, #tpu.memory_space<vmem>>, vector<1x48x1xf32>
    %17 = vector.shape_cast %16 : vector<1x48x1xf32> to vector<48x1xf32>
    %c0_28 = arith.constant 0 : index
    %c0_29 = arith.constant 0 : index
    %c0_30 = arith.constant 0 : index
    %c0_31 = arith.constant 0 : index
    %18 = vector.load %arg10[%c0_28, %c0_29, %c0_30, %c0_31] : memref<1x1x48x1xf32, #tpu.memory_space<vmem>>, vector<1x1x48x1xf32>
    %19 = vector.shape_cast %18 : vector<1x1x48x1xf32> to vector<1x48x1xf32>
    %20 = vector.shape_cast %19 : vector<1x48x1xf32> to vector<1x48x1xf32>
    %21 = vector.broadcast %20 : vector<1x48x1xf32> to vector<2x48x1xf32>
    %22 = arith.index_cast %arg0 : i32 to index
    %c0_32 = arith.constant 0 : index
    %23 = memref.load %arg11[%22, %c0_32] : memref<2x1xf32, #tpu.memory_space<smem>>
    %c0_33 = arith.constant 0 : index
    %c0_34 = arith.constant 0 : index
    %24 = memref.load %arg21[%c0_33, %c0_34] : memref<1x1xf32, #tpu.memory_space<smem>>
    %25 = vector.shape_cast %9 : vector<48x4xbf16> to vector<1x48x4xbf16>
    %26 = vector.shape_cast %25 : vector<1x48x4xbf16> to vector<1x48x4xbf16>
    %27 = vector.broadcast %26 : vector<1x48x4xbf16> to vector<2x48x4xbf16>
    %28 = vector.shape_cast %13 : vector<48x4xbf16> to vector<1x48x4xbf16>
    %29 = vector.shape_cast %28 : vector<1x48x4xbf16> to vector<1x48x4xbf16>
    %30 = vector.broadcast %29 : vector<1x48x4xbf16> to vector<2x48x4xbf16>
    %31 = vector.shape_cast %11 : vector<4x48xbf16> to vector<1x4x48xbf16>
    %32 = vector.shape_cast %31 : vector<1x4x48xbf16> to vector<1x4x48xbf16>
    %33 = vector.broadcast %32 : vector<1x4x48xbf16> to vector<2x4x48xbf16>
    %34 = arith.extf %15 : vector<48x8xbf16> to vector<48x8xf32>
    %cst = arith.constant dense<0.000000e+00> : vector<48x3xf32>
    %35 = tpu.matmul %34, %5, %cst {dimension_numbers = #tpu.dot_dimension_numbers<[1], [0], [0], [1], [0, 0, 1, 1], [], []>} : vector<48x8xf32>, vector<8x3xf32>, vector<48x3xf32> -> vector<48x3xf32>
    %36 = arith.extf %27 : vector<2x48x4xbf16> to vector<2x48x4xf32>
    "tpu.trace_start"() <{level = 10 : i32, message = "sen,snd->sed"}> : () -> ()
    %cst_35 = arith.constant dense<0.000000e+00> : vector<2x48x3xf32>
    %37 = tpu.matmul %36, %1, %cst_35 {dimension_numbers = #tpu.dot_dimension_numbers<[2], [1], [1], [2], [0, 0, 0, 1, 1, 2], [0], [0]>} : vector<2x48x4xf32>, vector<2x4x3xf32>, vector<2x48x3xf32> -> vector<2x48x3xf32>
    "tpu.trace_stop"() : () -> ()
    %38 = arith.extf %30 : vector<2x48x4xbf16> to vector<2x48x4xf32>
    "tpu.trace_start"() <{level = 10 : i32, message = "sen,snd->sed"}> : () -> ()
    %cst_36 = arith.constant dense<0.000000e+00> : vector<2x48x3xf32>
    %39 = tpu.matmul %38, %1, %cst_36 {dimension_numbers = #tpu.dot_dimension_numbers<[2], [1], [1], [2], [0, 0, 0, 1, 1, 2], [0], [0]>} : vector<2x48x4xf32>, vector<2x4x3xf32>, vector<2x48x3xf32> -> vector<2x48x3xf32>
    "tpu.trace_stop"() : () -> ()
    %40 = vector.shape_cast %35 : vector<48x3xf32> to vector<1x48x3xf32>
    %41 = vector.broadcast %40 : vector<1x48x3xf32> to vector<2x48x3xf32>
    %42 = arith.addf %39, %41 : vector<2x48x3xf32>
    %43 = arith.subf %37, %42 : vector<2x48x3xf32>
    %44 = arith.mulf %43, %43 : vector<2x48x3xf32>
    %cst_37 = arith.constant dense<0.000000e+00> : vector<2x48xf32>
    %45 = vector.multi_reduction <add>, %44, %cst_37 [2] : vector<2x48x3xf32> to vector<2x48xf32>
    %46 = vector.shape_cast %45 : vector<2x48xf32> to vector<2x48x1xf32>
    %47 = math.sqrt %46 : vector<2x48x1xf32>
    %48 = vector.shape_cast %3 : vector<2x4x79xf32> to vector<8x79xf32>
    %49 = arith.truncf %48 : vector<8x79xf32> to vector<8x79xbf16>
    %c0_38 = arith.constant 0 : index
    %c0_39 = arith.constant 0 : index
    %50 = vector.load %arg12[%c0_38, %c0_39] : memref<79x96xbf16, #tpu.memory_space<vmem>>, vector<79x96xbf16>
    %cst_40 = arith.constant dense<0.000000e+00> : vector<8x96xf32>
    %51 = tpu.matmul %49, %50, %cst_40 {dimension_numbers = #tpu.dot_dimension_numbers<[1], [0], [0], [1], [0, 0, 1, 1], [], []>} : vector<8x79xbf16>, vector<79x96xbf16>, vector<8x96xf32> -> vector<8x96xf32>
    %52 = vector.extract_strided_slice %51 {offsets = [0, 0], sizes = [8, 32], strides = [1, 1]} : vector<8x96xf32> to vector<8x32xf32>
    %53 = arith.truncf %52 : vector<8x32xf32> to vector<8x32xbf16>
    %54 = vector.shape_cast %53 : vector<8x32xbf16> to vector<2x4x32xbf16>
    %55 = vector.extract_strided_slice %51 {offsets = [0, 32], sizes = [8, 32], strides = [1, 1]} : vector<8x96xf32> to vector<8x32xf32>
    %56 = arith.truncf %55 : vector<8x32xf32> to vector<8x32xbf16>
    %57 = vector.shape_cast %56 : vector<8x32xbf16> to vector<2x4x32xbf16>
    %58 = vector.extract_strided_slice %51 {offsets = [0, 64], sizes = [8, 32], strides = [1, 1]} : vector<8x96xf32> to vector<8x32xf32>
    %59 = arith.truncf %7 : vector<8x79xf32> to vector<8x79xbf16>
    %c0_41 = arith.constant 0 : index
    %c0_42 = arith.constant 0 : index
    %60 = vector.load %arg13[%c0_41, %c0_42] : memref<79x32xbf16, #tpu.memory_space<vmem>>, vector<79x32xbf16>
    %cst_43 = arith.constant dense<0.000000e+00> : vector<8x32xf32>
    %61 = tpu.matmul %59, %60, %cst_43 {dimension_numbers = #tpu.dot_dimension_numbers<[1], [0], [0], [1], [0, 0, 1, 1], [], []>} : vector<8x79xbf16>, vector<79x32xbf16>, vector<8x32xf32> -> vector<8x32xf32>
    %c0_44 = arith.constant 0 : index
    %c0_45 = arith.constant 0 : index
    %62 = vector.load %arg14[%c0_44, %c0_45] : memref<3x32xf32, #tpu.memory_space<vmem>>, vector<3x32xf32>
    "tpu.trace_start"() <{level = 10 : i32, message = "sen,snk->sek"}> : () -> ()
    %cst_46 = arith.constant dense<0.000000e+00> : vector<2x48x32xf32>
    %63 = tpu.matmul %27, %54, %cst_46 {dimension_numbers = #tpu.dot_dimension_numbers<[2], [1], [1], [2], [0, 0, 0, 1, 1, 2], [0], [0]>} : vector<2x48x4xbf16>, vector<2x4x32xbf16>, vector<2x48x32xf32> -> vector<2x48x32xf32>
    %cst_47 = arith.constant dense<0.000000e+00> : vector<2x48x32xf32>
    %64 = tpu.matmul %30, %57, %cst_47 {dimension_numbers = #tpu.dot_dimension_numbers<[2], [1], [1], [2], [0, 0, 0, 1, 1, 2], [0], [0]>} : vector<2x48x4xbf16>, vector<2x4x32xbf16>, vector<2x48x32xf32> -> vector<2x48x32xf32>
    "tpu.trace_stop"() : () -> ()
    %65 = arith.addf %63, %64 : vector<2x48x32xf32>
    %66 = arith.truncf %61 : vector<8x32xf32> to vector<8x32xbf16>
    %cst_48 = arith.constant dense<0.000000e+00> : vector<48x32xf32>
    %67 = tpu.matmul %15, %66, %cst_48 {dimension_numbers = #tpu.dot_dimension_numbers<[1], [0], [0], [1], [0, 0, 1, 1], [], []>} : vector<48x8xbf16>, vector<8x32xbf16>, vector<48x32xf32> -> vector<48x32xf32>
    %68 = vector.shape_cast %67 : vector<48x32xf32> to vector<1x48x32xf32>
    %69 = vector.broadcast %68 : vector<1x48x32xf32> to vector<2x48x32xf32>
    %70 = arith.addf %65, %69 : vector<2x48x32xf32>
    %71 = vector.extract_strided_slice %62 {offsets = [0, 0], sizes = [1, 32], strides = [1, 1]} : vector<3x32xf32> to vector<1x32xf32>
    %72 = vector.shape_cast %71 : vector<1x32xf32> to vector<1x1x32xf32>
    %73 = vector.broadcast %47 : vector<2x48x1xf32> to vector<2x48x32xf32>
    %74 = vector.broadcast %72 : vector<1x1x32xf32> to vector<2x48x32xf32>
    %75 = arith.mulf %73, %74 : vector<2x48x32xf32>
    %76 = arith.addf %70, %75 : vector<2x48x32xf32>
    %77 = vector.shape_cast %17 : vector<48x1xf32> to vector<1x48x1xf32>
    %78 = vector.extract_strided_slice %62 {offsets = [1, 0], sizes = [1, 32], strides = [1, 1]} : vector<3x32xf32> to vector<1x32xf32>
    %79 = vector.shape_cast %78 : vector<1x32xf32> to vector<1x1x32xf32>
    %80 = vector.broadcast %77 : vector<1x48x1xf32> to vector<1x48x32xf32>
    %81 = vector.broadcast %79 : vector<1x1x32xf32> to vector<1x48x32xf32>
    %82 = arith.mulf %80, %81 : vector<1x48x32xf32>
    %83 = vector.broadcast %82 : vector<1x48x32xf32> to vector<2x48x32xf32>
    %84 = arith.addf %76, %83 : vector<2x48x32xf32>
    %85 = vector.extract_strided_slice %62 {offsets = [2, 0], sizes = [1, 32], strides = [1, 1]} : vector<3x32xf32> to vector<1x32xf32>
    %86 = vector.broadcast %23 : f32 to vector<1x32xf32>
    %87 = arith.mulf %86, %85 : vector<1x32xf32>
    %88 = vector.shape_cast %87 : vector<1x32xf32> to vector<1x1x32xf32>
    %89 = vector.broadcast %88 : vector<1x1x32xf32> to vector<2x48x32xf32>
    %90 = arith.addf %84, %89 : vector<2x48x32xf32>
    %c0_49 = arith.constant 0 : index
    %c0_50 = arith.constant 0 : index
    %91 = vector.load %arg15[%c0_49, %c0_50] : memref<1x32xf32, #tpu.memory_space<vmem>>, vector<1x32xf32>
    %92 = vector.shape_cast %91 : vector<1x32xf32> to vector<1x1x32xf32>
    %93 = vector.broadcast %92 : vector<1x1x32xf32> to vector<2x48x32xf32>
    %94 = arith.addf %90, %93 : vector<2x48x32xf32>
    %95 = vector.shape_cast %94 : vector<2x48x32xf32> to vector<96x32xf32>
    %96 = arith.negf %95 : vector<96x32xf32>
    %97 = math.exp %96 : vector<96x32xf32>
    %cst_51 = arith.constant 1.000000e+00 : f32
    %98 = vector.broadcast %cst_51 : f32 to vector<96x32xf32>
    %99 = arith.addf %98, %97 : vector<96x32xf32>
    %100 = arith.divf %98, %99 : vector<96x32xf32>
    %101 = arith.mulf %95, %100 : vector<96x32xf32>
    %102 = arith.truncf %101 : vector<96x32xf32> to vector<96x32xbf16>
    %c0_52 = arith.constant 0 : index
    %c0_53 = arith.constant 0 : index
    %103 = vector.load %arg16[%c0_52, %c0_53] : memref<32x32xbf16, #tpu.memory_space<vmem>>, vector<32x32xbf16>
    %cst_54 = arith.constant dense<0.000000e+00> : vector<96x32xf32>
    %104 = tpu.matmul %102, %103, %cst_54 {dimension_numbers = #tpu.dot_dimension_numbers<[1], [0], [0], [1], [0, 0, 1, 1], [], []>} : vector<96x32xbf16>, vector<32x32xbf16>, vector<96x32xf32> -> vector<96x32xf32>
    %c0_55 = arith.constant 0 : index
    %c0_56 = arith.constant 0 : index
    %105 = vector.load %arg17[%c0_55, %c0_56] : memref<1x32xf32, #tpu.memory_space<vmem>>, vector<1x32xf32>
    %106 = vector.broadcast %105 : vector<1x32xf32> to vector<96x32xf32>
    %107 = arith.addf %104, %106 : vector<96x32xf32>
    %108 = arith.negf %107 : vector<96x32xf32>
    %109 = math.exp %108 : vector<96x32xf32>
    %cst_57 = arith.constant 1.000000e+00 : f32
    %110 = vector.broadcast %cst_57 : f32 to vector<96x32xf32>
    %111 = arith.addf %110, %109 : vector<96x32xf32>
    %112 = arith.divf %110, %111 : vector<96x32xf32>
    %113 = arith.mulf %107, %112 : vector<96x32xf32>
    %114 = arith.truncf %113 : vector<96x32xf32> to vector<96x32xbf16>
    %c0_58 = arith.constant 0 : index
    %c0_59 = arith.constant 0 : index
    %115 = vector.load %arg18[%c0_58, %c0_59] : memref<32x32xbf16, #tpu.memory_space<vmem>>, vector<32x32xbf16>
    %cst_60 = arith.constant dense<0.000000e+00> : vector<96x32xf32>
    %116 = tpu.matmul %114, %115, %cst_60 {dimension_numbers = #tpu.dot_dimension_numbers<[1], [0], [0], [1], [0, 0, 1, 1], [], []>} : vector<96x32xbf16>, vector<32x32xbf16>, vector<96x32xf32> -> vector<96x32xf32>
    %c0_61 = arith.constant 0 : index
    %c0_62 = arith.constant 0 : index
    %117 = vector.load %arg19[%c0_61, %c0_62] : memref<1x32xf32, #tpu.memory_space<vmem>>, vector<1x32xf32>
    %118 = vector.broadcast %117 : vector<1x32xf32> to vector<96x32xf32>
    %119 = arith.addf %116, %118 : vector<96x32xf32>
    %120 = arith.negf %119 : vector<96x32xf32>
    %121 = math.exp %120 : vector<96x32xf32>
    %cst_63 = arith.constant 1.000000e+00 : f32
    %122 = vector.broadcast %cst_63 : f32 to vector<96x32xf32>
    %123 = arith.addf %122, %121 : vector<96x32xf32>
    %124 = arith.divf %122, %123 : vector<96x32xf32>
    %125 = arith.mulf %119, %124 : vector<96x32xf32>
    %c0_64 = arith.constant 0 : index
    %c0_65 = arith.constant 0 : index
    %126 = vector.load %arg20[%c0_64, %c0_65] : memref<1x32xf32, #tpu.memory_space<vmem>>, vector<1x32xf32>
    %127 = vector.broadcast %126 : vector<1x32xf32> to vector<96x32xf32>
    %128 = arith.mulf %125, %127 : vector<96x32xf32>
    %cst_66 = arith.constant dense<0.000000e+00> : vector<96xf32>
    %129 = vector.multi_reduction <add>, %128, %cst_66 [1] : vector<96x32xf32> to vector<96xf32>
    %130 = vector.shape_cast %129 : vector<96xf32> to vector<96x1xf32>
    %131 = vector.broadcast %24 : f32 to vector<96x1xf32>
    %132 = arith.addf %130, %131 : vector<96x1xf32>
    %133 = vector.shape_cast %21 : vector<2x48x1xf32> to vector<96x1xf32>
    %134 = vector.broadcast %133 : vector<96x1xf32> to vector<96x32xf32>
    %135 = arith.mulf %113, %134 : vector<96x32xf32>
    %136 = vector.shape_cast %135 : vector<96x32xf32> to vector<2x48x32xf32>
    %137 = vector.shape_cast %132 : vector<96x1xf32> to vector<2x48x1xf32>
    %138 = arith.mulf %137, %21 : vector<2x48x1xf32>
    %139 = vector.broadcast %138 : vector<2x48x1xf32> to vector<2x48x3xf32>
    %140 = arith.mulf %43, %139 : vector<2x48x3xf32>
    %141 = arith.truncf %136 : vector<2x48x32xf32> to vector<2x48x32xbf16>
    "tpu.trace_start"() <{level = 10 : i32, message = "sne,sek->snk"}> : () -> ()
    %cst_67 = arith.constant dense<0.000000e+00> : vector<2x4x32xf32>
    %142 = tpu.matmul %33, %141, %cst_67 {dimension_numbers = #tpu.dot_dimension_numbers<[2], [1], [1], [2], [0, 0, 0, 1, 1, 2], [0], [0]>} : vector<2x4x48xbf16>, vector<2x48x32xbf16>, vector<2x4x32xf32> -> vector<2x4x32xf32>
    "tpu.trace_stop"() : () -> ()
    %143 = arith.extf %33 : vector<2x4x48xbf16> to vector<2x4x48xf32>
    "tpu.trace_start"() <{level = 10 : i32, message = "sne,sed->snd"}> : () -> ()
    %cst_68 = arith.constant dense<0.000000e+00> : vector<2x4x3xf32>
    %144 = tpu.matmul %143, %140, %cst_68 {dimension_numbers = #tpu.dot_dimension_numbers<[2], [1], [1], [2], [0, 0, 0, 1, 1, 2], [0], [0]>} : vector<2x4x48xf32>, vector<2x48x3xf32>, vector<2x4x3xf32> -> vector<2x4x3xf32>
    "tpu.trace_stop"() : () -> ()
    %145 = vector.shape_cast %142 : vector<2x4x32xf32> to vector<8x32xf32>
    %146 = arith.truncf %145 : vector<8x32xf32> to vector<8x32xbf16>
    %c0_69 = arith.constant 0 : index
    %c0_70 = arith.constant 0 : index
    %147 = vector.load %arg22[%c0_69, %c0_70] : memref<32x32xbf16, #tpu.memory_space<vmem>>, vector<32x32xbf16>
    %cst_71 = arith.constant dense<0.000000e+00> : vector<8x32xf32>
    %148 = tpu.matmul %146, %147, %cst_71 {dimension_numbers = #tpu.dot_dimension_numbers<[1], [0], [0], [1], [0, 0, 1, 1], [], []>} : vector<8x32xbf16>, vector<32x32xbf16>, vector<8x32xf32> -> vector<8x32xf32>
    %149 = arith.addf %58, %148 : vector<8x32xf32>
    %c0_72 = arith.constant 0 : index
    %c0_73 = arith.constant 0 : index
    %150 = vector.load %arg23[%c0_72, %c0_73] : memref<1x32xf32, #tpu.memory_space<vmem>>, vector<1x32xf32>
    %151 = vector.broadcast %150 : vector<1x32xf32> to vector<8x32xf32>
    %152 = arith.addf %149, %151 : vector<8x32xf32>
    %153 = arith.negf %152 : vector<8x32xf32>
    %154 = math.exp %153 : vector<8x32xf32>
    %cst_74 = arith.constant 1.000000e+00 : f32
    %155 = vector.broadcast %cst_74 : f32 to vector<8x32xf32>
    %156 = arith.addf %155, %154 : vector<8x32xf32>
    %157 = arith.divf %155, %156 : vector<8x32xf32>
    %158 = arith.mulf %152, %157 : vector<8x32xf32>
    %159 = arith.truncf %158 : vector<8x32xf32> to vector<8x32xbf16>
    %c0_75 = arith.constant 0 : index
    %c0_76 = arith.constant 0 : index
    %160 = vector.load %arg24[%c0_75, %c0_76] : memref<32x79xbf16, #tpu.memory_space<vmem>>, vector<32x79xbf16>
    %cst_77 = arith.constant dense<0.000000e+00> : vector<8x79xf32>
    %161 = tpu.matmul %159, %160, %cst_77 {dimension_numbers = #tpu.dot_dimension_numbers<[1], [0], [0], [1], [0, 0, 1, 1], [], []>} : vector<8x32xbf16>, vector<32x79xbf16>, vector<8x79xf32> -> vector<8x79xf32>
    %c0_78 = arith.constant 0 : index
    %c0_79 = arith.constant 0 : index
    %162 = vector.load %arg25[%c0_78, %c0_79] : memref<1x79xf32, #tpu.memory_space<vmem>>, vector<1x79xf32>
    %163 = vector.broadcast %162 : vector<1x79xf32> to vector<8x79xf32>
    %164 = arith.addf %161, %163 : vector<8x79xf32>
    %165 = vector.shape_cast %164 : vector<8x79xf32> to vector<2x4x79xf32>
    %166 = arith.addf %3, %165 : vector<2x4x79xf32>
    %c0_80 = arith.constant 0 : index
    %c0_81 = arith.constant 0 : index
    %c0_82 = arith.constant 0 : index
    %c0_83 = arith.constant 0 : index
    %167 = vector.load %arg27[%c0_80, %c0_81, %c0_82, %c0_83] : memref<1x2x4x79xf32, #tpu.memory_space<vmem>>, vector<1x2x4x79xf32>
    %168 = vector.shape_cast %167 : vector<1x2x4x79xf32> to vector<2x4x79xf32>
    %169 = vector.shape_cast %166 : vector<2x4x79xf32> to vector<1x2x4x79xf32>
    tpu.vector_store %arg27[%c0_80, %c0_81, %c0_82, %c0_83], %169 {strides = array<i32>} : memref<1x2x4x79xf32, #tpu.memory_space<vmem>>, vector<1x2x4x79xf32>,
    %170 = arith.addf %1, %144 : vector<2x4x3xf32>
    %c0_84 = arith.constant 0 : index
    %c0_85 = arith.constant 0 : index
    %c0_86 = arith.constant 0 : index
    %c0_87 = arith.constant 0 : index
    %171 = vector.load %arg26[%c0_84, %c0_85, %c0_86, %c0_87] : memref<1x2x4x3xf32, #tpu.memory_space<vmem>>, vector<1x2x4x3xf32>
    %172 = vector.shape_cast %171 : vector<1x2x4x3xf32> to vector<2x4x3xf32>
    %173 = vector.shape_cast %170 : vector<2x4x3xf32> to vector<1x2x4x3xf32>
    tpu.vector_store %arg26[%c0_84, %c0_85, %c0_86, %c0_87], %173 {strides = array<i32>} : memref<1x2x4x3xf32, #tpu.memory_space<vmem>>, vector<1x2x4x3xf32>,
    return
  }
  func.func @transform_0(%arg0: i32) -> (i32, i32, i32, i32) {
    %c0_i32 = arith.constant 0 : i32
    %c0_i32_0 = arith.constant 0 : i32
    %c0_i32_1 = arith.constant 0 : i32
    %c0_i32_2 = arith.constant 0 : i32
    return %arg0, %c0_i32, %c0_i32_0, %c0_i32_1 : i32, i32, i32, i32
  }
  func.func @transform_1(%arg0: i32) -> (i32, i32, i32, i32) {
    %c0_i32 = arith.constant 0 : i32
    %c0_i32_0 = arith.constant 0 : i32
    %c0_i32_1 = arith.constant 0 : i32
    %c0_i32_2 = arith.constant 0 : i32
    return %arg0, %c0_i32, %c0_i32_0, %c0_i32_1 : i32, i32, i32, i32
  }
  func.func @transform_2(%arg0: i32) -> (i32, i32, i32) {
    %c0_i32 = arith.constant 0 : i32
    %c0_i32_0 = arith.constant 0 : i32
    %c0_i32_1 = arith.constant 0 : i32
    return %arg0, %c0_i32, %c0_i32_0 : i32, i32, i32
  }
  func.func @transform_3(%arg0: i32) -> (i32, i32, i32) {
    %c0_i32 = arith.constant 0 : i32
    %c0_i32_0 = arith.constant 0 : i32
    %c0_i32_1 = arith.constant 0 : i32
    return %arg0, %c0_i32, %c0_i32_0 : i32, i32, i32
  }
  func.func @transform_4(%arg0: i32) -> (i32, i32, i32) {
    %c0_i32 = arith.constant 0 : i32
    %c0_i32_0 = arith.constant 0 : i32
    %c0_i32_1 = arith.constant 0 : i32
    return %arg0, %c0_i32, %c0_i32_0 : i32, i32, i32
  }
  func.func @transform_5(%arg0: i32) -> (i32, i32, i32) {
    %c0_i32 = arith.constant 0 : i32
    %c0_i32_0 = arith.constant 0 : i32
    %c0_i32_1 = arith.constant 0 : i32
    return %arg0, %c0_i32, %c0_i32_0 : i32, i32, i32
  }
  func.func @transform_6(%arg0: i32) -> (i32, i32, i32) {
    %c0_i32 = arith.constant 0 : i32
    %c0_i32_0 = arith.constant 0 : i32
    %c0_i32_1 = arith.constant 0 : i32
    return %arg0, %c0_i32, %c0_i32_0 : i32, i32, i32
  }
  func.func @transform_7(%arg0: i32) -> (i32, i32, i32) {
    %c0_i32 = arith.constant 0 : i32
    %c0_i32_0 = arith.constant 0 : i32
    %c0_i32_1 = arith.constant 0 : i32
    return %arg0, %c0_i32, %c0_i32_0 : i32, i32, i32
  }
  func.func @transform_8(%arg0: i32) -> (i32, i32, i32) {
    %c0_i32 = arith.constant 0 : i32
    %c0_i32_0 = arith.constant 0 : i32
    %c0_i32_1 = arith.constant 0 : i32
    return %arg0, %c0_i32, %c0_i32_0 : i32, i32, i32
  }
  func.func @transform_9(%arg0: i32) -> (i32, i32, i32, i32) {
    %c0_i32 = arith.constant 0 : i32
    %c0_i32_0 = arith.constant 0 : i32
    %c0_i32_1 = arith.constant 0 : i32
    %c0_i32_2 = arith.constant 0 : i32
    return %arg0, %c0_i32, %c0_i32_0, %c0_i32_1 : i32, i32, i32, i32
  }
  func.func @transform_10(%arg0: i32) -> (i32, i32) {
    %c0_i32 = arith.constant 0 : i32
    %c0_i32_0 = arith.constant 0 : i32
    %c0_i32_1 = arith.constant 0 : i32
    return %c0_i32, %c0_i32_0 : i32, i32
  }
  func.func @transform_11(%arg0: i32) -> (i32, i32) {
    %c0_i32 = arith.constant 0 : i32
    %c0_i32_0 = arith.constant 0 : i32
    %c0_i32_1 = arith.constant 0 : i32
    return %c0_i32, %c0_i32_0 : i32, i32
  }
  func.func @transform_12(%arg0: i32) -> (i32, i32) {
    %c0_i32 = arith.constant 0 : i32
    %c0_i32_0 = arith.constant 0 : i32
    %c0_i32_1 = arith.constant 0 : i32
    return %c0_i32, %c0_i32_0 : i32, i32
  }
  func.func @transform_13(%arg0: i32) -> (i32, i32) {
    %c0_i32 = arith.constant 0 : i32
    %c0_i32_0 = arith.constant 0 : i32
    %c0_i32_1 = arith.constant 0 : i32
    return %c0_i32, %c0_i32_0 : i32, i32
  }
  func.func @transform_14(%arg0: i32) -> (i32, i32) {
    %c0_i32 = arith.constant 0 : i32
    %c0_i32_0 = arith.constant 0 : i32
    %c0_i32_1 = arith.constant 0 : i32
    return %c0_i32, %c0_i32_0 : i32, i32
  }
  func.func @transform_15(%arg0: i32) -> (i32, i32) {
    %c0_i32 = arith.constant 0 : i32
    %c0_i32_0 = arith.constant 0 : i32
    %c0_i32_1 = arith.constant 0 : i32
    return %c0_i32, %c0_i32_0 : i32, i32
  }
  func.func @transform_16(%arg0: i32) -> (i32, i32) {
    %c0_i32 = arith.constant 0 : i32
    %c0_i32_0 = arith.constant 0 : i32
    %c0_i32_1 = arith.constant 0 : i32
    return %c0_i32, %c0_i32_0 : i32, i32
  }
  func.func @transform_17(%arg0: i32) -> (i32, i32) {
    %c0_i32 = arith.constant 0 : i32
    %c0_i32_0 = arith.constant 0 : i32
    %c0_i32_1 = arith.constant 0 : i32
    return %c0_i32, %c0_i32_0 : i32, i32
  }
  func.func @transform_18(%arg0: i32) -> (i32, i32) {
    %c0_i32 = arith.constant 0 : i32
    %c0_i32_0 = arith.constant 0 : i32
    %c0_i32_1 = arith.constant 0 : i32
    return %c0_i32, %c0_i32_0 : i32, i32
  }
  func.func @transform_19(%arg0: i32) -> (i32, i32) {
    %c0_i32 = arith.constant 0 : i32
    %c0_i32_0 = arith.constant 0 : i32
    %c0_i32_1 = arith.constant 0 : i32
    return %c0_i32, %c0_i32_0 : i32, i32
  }
  func.func @transform_20(%arg0: i32) -> (i32, i32) {
    %c0_i32 = arith.constant 0 : i32
    %c0_i32_0 = arith.constant 0 : i32
    %c0_i32_1 = arith.constant 0 : i32
    return %c0_i32, %c0_i32_0 : i32, i32
  }
  func.func @transform_21(%arg0: i32) -> (i32, i32) {
    %c0_i32 = arith.constant 0 : i32
    %c0_i32_0 = arith.constant 0 : i32
    %c0_i32_1 = arith.constant 0 : i32
    return %c0_i32, %c0_i32_0 : i32, i32
  }
  func.func @transform_22(%arg0: i32) -> (i32, i32) {
    %c0_i32 = arith.constant 0 : i32
    %c0_i32_0 = arith.constant 0 : i32
    %c0_i32_1 = arith.constant 0 : i32
    return %c0_i32, %c0_i32_0 : i32, i32
  }
  func.func @transform_23(%arg0: i32) -> (i32, i32) {
    %c0_i32 = arith.constant 0 : i32
    %c0_i32_0 = arith.constant 0 : i32
    %c0_i32_1 = arith.constant 0 : i32
    return %c0_i32, %c0_i32_0 : i32, i32
  }
  func.func @transform_24(%arg0: i32) -> (i32, i32) {
    %c0_i32 = arith.constant 0 : i32
    %c0_i32_0 = arith.constant 0 : i32
    %c0_i32_1 = arith.constant 0 : i32
    return %c0_i32, %c0_i32_0 : i32, i32
  }
  func.func @transform_25(%arg0: i32) -> (i32, i32, i32, i32) {
    %c0_i32 = arith.constant 0 : i32
    %c0_i32_0 = arith.constant 0 : i32
    %c0_i32_1 = arith.constant 0 : i32
    %c0_i32_2 = arith.constant 0 : i32
    return %arg0, %c0_i32, %c0_i32_0, %c0_i32_1 : i32, i32, i32, i32
  }
  func.func @transform_26(%arg0: i32) -> (i32, i32, i32, i32) {
    %c0_i32 = arith.constant 0 : i32
    %c0_i32_0 = arith.constant 0 : i32
    %c0_i32_1 = arith.constant 0 : i32
    %c0_i32_2 = arith.constant 0 : i32
    return %arg0, %c0_i32, %c0_i32_0, %c0_i32_1 : i32, i32, i32, i32
  }
}

</mosaic_0001>

<bundles_post_ra>
// kernel: dynamics_hydrogen_forward.2
= control target key start
LH: loop header
LB: loop body
LE: loop exit
PB: predicated region body
PF: predicated region fallthrough
CT: control target
= control target key end

     0   :  { %s5804_s0 = inlined_call_operand.vmem [shape: f32[2,2,4,3], index: 0, kind: input, shape index: {}, may-alias: {0,25}]   ;;  %s5805_s1 = inlined_call_operand.vmem [shape: f32[2,2,4,79], index: 1, kind: input, shape index: {}, may-alias: {1,26}]   ;;  %s5806_s2 = inlined_call_operand.vmem [shape: f32[2,8,3], index: 2, kind: input, shape index: {}]   ;;  %s5807_s3 = inlined_call_operand.vmem [shape: f32[2,8,79], index: 3, kind: input, shape index: {}]   ;;  %s5808_s4 = inlined_call_operand.vmem [shape: bf16[2,48,4], index: 4, kind: input, shape index: {}]   ;;  %s5809_s5 = inlined_call_operand.vmem [shape: bf16[2,4,48], index: 5, kind: input, shape index: {}]   ;;  %s5810_s6 = inlined_call_operand.vmem [shape: bf16[2,48,4], index: 6, kind: input, shape index: {}]   ;;  %s5811_s7 = inlined_call_operand.vmem [shape: bf16[2,48,8], index: 7, kind: input, shape index: {}]   ;;  %s5812_s8 = inlined_call_operand.vmem [shape: f32[2,48,1], index: 8, kind: input, shape index: {}]   ;;  %s5813_s9 = inlined_call_operand.vmem [shape: f32[2,1,48,1], index: 9, kind: input, shape index: {}]   ;;  %s5814_s10 = inlined_call_operand.vmem [shape: f32[2,1], index: 10, kind: input, shape index: {}]   ;;  %s5815_s11 = inlined_call_operand.vmem [shape: bf16[79,96], index: 11, kind: input, shape index: {}]   ;;  %s5816_s12 = inlined_call_operand.vmem [shape: bf16[79,32], index: 12, kind: input, shape index: {}]   ;;  %s5817_s13 = inlined_call_operand.vmem [shape: f32[3,32], index: 13, kind: input, shape index: {}]   ;;  %s5818_s14 = inlined_call_operand.vmem [shape: f32[1,32], index: 14, kind: input, shape index: {}]   ;;  %s5819_s15 = inlined_call_operand.vmem [shape: bf16[32,32], index: 15, kind: input, shape index: {}]   ;;  %s5820_s16 = inlined_call_operand.vmem [shape: f32[1,32], index: 16, kind: input, shape index: {}]   ;;  %s5821_s17 = inlined_call_operand.vmem [shape: bf16[32,32], index: 17, kind: input, shape index: {}]   ;;  %s5822_s18 = inlined_call_operand.vmem [shape: f32[1,32], index: 18, kind: input, shape index: {}]   ;;  %s5823_s19 = inlined_call_operand.vmem [shape: f32[1,32], index: 19, kind: input, shape index: {}]   ;;  %s5824_s20 = inlined_call_operand.<no memory space> [shape: f32[1,1], index: 20, kind: input, shape index: {}]   ;;  %s5825_s21 = inlined_call_operand.vmem [shape: bf16[32,32], index: 21, kind: input, shape index: {}]   ;;  %s5826_s22 = inlined_call_operand.vmem [shape: f32[1,32], index: 22, kind: input, shape index: {}]   ;;  %s5827_s23 = inlined_call_operand.vmem [shape: bf16[32,79], index: 23, kind: input, shape index: {}]   ;;  %s5828_s24 = inlined_call_operand.vmem [shape: f32[1,79], index: 24, kind: input, shape index: {}]   ;;  %s5829_s25 = inlined_call_operand.vmem [shape: f32[2,2,4,3], index: 25, kind: output, shape index: {0}, may-alias: {0,25}]   ;;  %s5830_s26 = inlined_call_operand.vmem [shape: f32[2,2,4,79], index: 26, kind: output, shape index: {1}, may-alias: {1,26}]  }
   0x1   :  { %5847 = sst [smem:[#allocation20_spill]] %s5804_s0 }
   0x2   :  { %5848 = sst [smem:[#allocation21_spill]] %s5805_s1 }
   0x3   :  { %5849 = sst [smem:[#allocation22_spill]] %s5806_s2 }
   0x4   :  { %5850 = sst [smem:[#allocation23_spill]] %s5807_s3 }
   0x5   :  { %5851 = sst [smem:[#allocation24_spill]] %s5808_s4 }
   0x6   :  { %5852 = sst [smem:[#allocation25_spill]] %s5809_s5 }
   0x7   :  { %5853 = sst [smem:[#allocation26_spill]] %s5810_s6 }
   0x8   :  { %5854 = sst [smem:[#allocation27_spill]] %s5811_s7 }
   0x9   :  { %5855 = sst [smem:[#allocation28_spill]] %s5812_s8 }
   0xa   :  { %5856 = sst [smem:[#allocation29_spill]] %s5813_s9 }
   0xb   :  { %5857 = sst [smem:[#allocation30_spill]] %s5814_s10 }
   0xc   :  { %32 = sst [smem:[#allocation2]] %s5824_s20 }
   0xd   :  { %33 = vsyncpa [#allocation4], 0  ;;  %s4714_s7 = smov 0  }
   0xe LB: > { %5858 = sst [smem:[#allocation6_spill]] %s4566_s7  ;;  %s4720_s28 = sadd.s32 4294967295, %s4566_s7   ;;  %s4566_s7 = sphi %s4714_s7, %s39_s7  }
   0xf   : > { %p3762_p0 = scmp.ge.s32.totalorder %s4566_s7, 1  ;;  %p671_p1 = scmp.lt.s32.totalorder %s4566_s7, 3 }
  0x10   : > { %s5859_s20 = sld [smem:[#allocation30_spill]]  ;;  %p4303_p3 = scmp.eq.s32.totalorder %s4720_s28, 0 }
  0x11   : > { %p4727_p2 = pnand %p3762_p0, %p671_p1 }
  0x13   : > { %p4299_p4 = pneg %p4727_p2 }
  0x15   : > { %p4300_p5 = pnand %p4303_p3, %p4299_p4 }
  0x16   : > { %s684_s29 = sshll.u32 %s5859_s20, 4  ;;  %s685_s29 = int_to_ptr.vmem [resolvable:$true] %s684_s29 }
  0x17   : > { %s4541_s9 = scalar_lea.vmem %s685_s29, 32  ;;  %p4543_p7 = pneg %p4300_p5 }
  0x18   : > { %p4542_p6 = scmp.ne.s32.totalorder %s685_s29, %s4541_s9  ;;  %p4549_p10 = scmp.lt.s32.totalorder %s685_s29, %s685_s29 }
  0x19   : > { %p4550_p11 = scmp.lt.s32.totalorder %s4541_s9, %s4541_s9 }
  0x1a   : > { %p4544_p8 = pnand %p4543_p7, %p4542_p6 }
  0x1b   : > { %p4551_p12 = por %p4550_p11, %p4549_p10 }
  0x1c   : > { %p4545_p9 = pneg %p4544_p8 }
  0x1e   : > { %p4552_p13 = pnand %p4551_p12, %p4545_p9 }
  0x20   : > { %4555 = shalt.err (!%p4552_p13)
}
  0x21   : > { %s4568_s30 = smov [#allocation3]   ;;  %816 = sbr.rel (%p4727_p2) target bundleno = 2168 (0x878), region = 120 }
  0x22   : > { %4302 = dma.vmem_to_smem (!%p4300_p5), %s685_s29, 32, %s4568_s30, [#allocation4]  }
  0x26   : > { %4561 = dma.done.wait (%p4303_p3), [#allocation4], 32  }
  0x27   : > { %4563 = vsyncadd (%p4303_p3), [#allocation4], 4294967264 }
  0x28   : > { %822 = sfence }
  0x29   : > { %p934_p0 = scmp.lt.s32.totalorder %s4720_s28, 1  ;;  %vm1177_vm0 = vcmask 1043456   ;;  %s5861_s27 = sld [smem:[#allocation20_spill]]  ;;  %vm1038_vm1 = vcmask 64512   ;;  %vm1158_vm2 = vcmask 31744   ;;  %vm1781_vm3 = vcmask 1046528  }
  0x2a   : > { %s5862_s20 = sld [smem:[#allocation22_spill]]  ;;  %v4326_v15 = vld [vmem:[%s5815_s11 + $0x20] sm:$0xff]   ;;  %vm1782_vm4 = vcmask 1047552   ;;  %v4569_v16 = vmov 65535   ;;  %v5832_v23 = vmov 0.0   ;;  %v4328_v34 = vld [vmem:[%s5815_s11 + $0x18] sm:$0xff]  }
  0x2b   : > { %s4744_s2 = scalar_select %p934_p0, %s4720_s28, 1  ;;  %v1783_v17 = vsel %vm1781_vm3, 4294967295, %v4569_v16  ;;  %v4329_v37 = vld [vmem:[%s5815_s11 + $0x10] sm:$0xff]   ;;  %v4330_v40 = vld [vmem:[%s5815_s11 + $0x8] sm:$0xff]   ;;  %vm4571_vm5 = vmmov 0   ;;  %v4331_v42 = vld [vmem:[%s5815_s11] sm:$0xff]  }
  0x2c   : > { %s5863_s30 = sld [smem:[#allocation27_spill]]  ;;  %v4825_v24 = vsel %vm1782_vm4, %v1783_v17, 0  ;;  %v4333_v43 = vld [vmem:[%s5816_s12 + $0x20] sm:$0xff]   ;;  %vm1777_vm6 = vcmask 646144   ;;  %v4334_v46 = vld [vmem:[%s5816_s12 + $0x18] sm:$0xff]   ;;  %v4335_v47 = vld [vmem:[%s5816_s12 + $0x10] sm:$0xff]  }
  0x2d   : > { %s4747_s5 = sshll.u32 %s4744_s2, 3  ;;  %s4293_s10 = smul.u32 24, %s4744_s2  ;;  %v1786_v30 = vand.u32 %v4326_v15, %v4825_v24  ;;  %v1882_v45 = vand.u32 %v4333_v43, %v4825_v24  ;;  %v4336_v48 = vld [vmem:[%s5816_s12 + $0x8] sm:$0xff]   ;;  %v4337_v49 = vld [vmem:[%s5816_s12] sm:$0xff]   ;;  %v4572_v52 = vmov 0   ;;  %vm1612_vm7 = vcmask 23552  }
  0x2e   : > { %s5867_s4 = sld [smem:[#allocation21_spill]]  ;;  %4321 = vset.pattern.permute.xlu1 %v4572_v52  ;;  %4322 = vset.pattern.permute.xlu0 %v4572_v52  ;;  %s4574_s1 = smov 96   ;;  %vm1958_vm8 = vcmask 1041408  }
  0x2f   : > { %s4754_s3 = scalar_lea.vmem %s5861_s27, %s4747_s5  ;;  %s5864_s27 = sld [smem:[#allocation24_spill]] }
  0x30   : > { %s947_s29 = scalar_lea.vmem %s5862_s20, %s4747_s5  ;;  %v992_v0 = vld [vmem:[%s4754_s3] sm:$0xf]  ;;  %v4814_v20 = vld [vmem:[%s4754_s3 + $0x4] sm:$0xf]  ;;  %s5868_s9 = sld [smem:[#allocation23_spill]] }
  0x31   : > { %v996_v1 = vld [vmem:[%s947_s29] sm:$0xff]  ;;  %4291 = vmatprep.subr.msk.mxu1 %vm1177_vm0, %v992_v0  ;;  %s5865_s29 = sld [smem:[#allocation26_spill]]  ;;  %5866 = vst [vmem:[#allocation7_spill] sm:$0xff] %v4814_v20 }
  0x32   : > { %s970_s7 = scalar_lea.vmem %s5863_s30, %s4293_s10  ;;  %4040 = vmatprep.subr.mxu0 %v996_v1  ;;  %4292 = vmatpush3.msk.msra.mxu1 %vm1177_vm0, %v992_v0 }
  0x33   : > { %v4765_v2 = vld [vmem:[%s970_s7] sm:$0xff]   ;;  %v4773_v3 = vld [vmem:[%s970_s7 + $0x8] sm:$0xff]   ;;  %4041 = vmatpush3.msra.mxu0 %v996_v1  ;;  %4073 = vmatprep.subr.msk.mxu1 %vm1177_vm0, %v992_v0  ;;  %v4793_v12 = vld [vmem:[%s970_s7 + $0x10] sm:$0xff]  }
  0x34   : > { %v1032_v4 = vunpack.c.l.bf16 %v4765_v2  ;;  %v1033_v5 = vunpack.c.h.bf16 %v4765_v2  ;;  %v1034_v7 = vunpack.c.l.bf16 %v4773_v3  ;;  %4051 = vmatprep.subr.msk.mxu0 %vm1177_vm0, %v992_v0  ;;  %v1035_v14 = vunpack.c.h.bf16 %v4773_v3  ;;  %s4871_s20 = scalar_lea.vmem %s5867_s4, %s4747_s5  ;;  %s3783_s4 = sshll.u32 %s4720_s28, 7 }
  0x35   : > { %s4771_s8 = scalar_lea.vmem %s5864_s27, %s4293_s10  ;;  %v1036_v19 = vunpack.c.l.bf16 %v4793_v12  ;;  %v1037_v26 = vunpack.c.h.bf16 %v4793_v12  ;;  %v994_v38 = vld [vmem:[%s4871_s20] sm:$0xf]  ;;  %v995_v39 = vld [vmem:[%s4871_s20 + $0x4] sm:$0xf]  ;;  %s4294_s27 = smul.u32 48, %s4744_s2 }
  0x36   : > { %v4783_v6 = vld [vmem:[%s4771_s8 + $0x8] sm:$0xff]   ;;  %v4787_v8 = vld [vmem:[%s4771_s8 + $0x10] sm:$0xff]   ;;  %4042 = vmatprep.mubr.msk.f32.mxu0 %vm1038_vm1, %v1032_v4  ;;  %v4822_v22 = vld [vmem:[%s4771_s8] sm:$0xff]   ;;  %v1735_v41 = vcombine.low %v994_v38, %v995_v39  ;;  %s951_s7 = scalar_lea.vmem %s5868_s9, %s4747_s5  ;;  %s990_s28 = scalar_lea.vmem %s5830_s26, %s4747_s5 }
  0x37   : > { %s4778_s0 = scalar_lea.vmem %s5865_s29, %s4293_s10  ;;  %v1154_v9 = vunpack.c.l.bf16 %v4783_v6  ;;  %v1155_v10 = vunpack.c.h.bf16 %v4783_v6  ;;  %v1156_v11 = vunpack.c.l.bf16 %v4787_v8  ;;  %4043 = vmatmul.mubr.msk.f32.vlgmr.msra.gmra.mxu0 %vm1038_vm1, %v1033_v5  ;;  %v1157_v18 = vunpack.c.h.bf16 %v4787_v8  ;;  %v997_v50 = vld [vmem:[%s951_s7] sm:$0xff]  ;;  %s5878_s29 = sld [smem:[#allocation28_spill]] }
  0x38   : > { %v4798_v13 = vld [vmem:[%s4778_s0] sm:$0xff]   ;;  %4045 = vmatprep.mubr.msk.f32.mxu0 %vm1038_vm1, %v1034_v7  ;;  %4052 = vmatpush3.msk.msra.mxu0 %vm1177_vm0, %v992_v0  ;;  %v4829_v25 = vld [vmem:[%s4778_s0 + $0x8] sm:$0xff]   ;;  %v1152_v28 = vunpack.c.l.bf16 %v4822_v22  ;;  %v4842_v29 = vld [vmem:[%s4778_s0 + $0x10] sm:$0xff]   ;;  %v1153_v32 = vunpack.c.h.bf16 %v4822_v22  ;;  %v1737_v44 = vpack.c.bf16 %v1735_v41, %v1735_v41  ;;  %v1838_v51 = vpack.c.bf16 %v997_v50, %v997_v50  ;;  %s5882_s7 = sld [smem:[#allocation29_spill]] }
  0x39   : > { %4056 = vmatprep.mubr.msk.f32.mxu1 %vm1158_vm2, %v1154_v9  ;;  %v1374_v21 = vunpack.c.l.bf16 %v4798_v13  ;;  %4062 = vmatprep.subr.msk.mxu0 %vm1177_vm0, %v4814_v20  ;;  %v1375_v27 = vunpack.c.h.bf16 %v4798_v13  ;;  %v1376_v31 = vunpack.c.l.bf16 %v4829_v25  ;;  %v1377_v33 = vunpack.c.h.bf16 %v4829_v25  ;;  %s5884_s10 = sld [smem:[#allocation25_spill]] }
  0x3a   : > { %4057 = vmatmul.mubr.msk.f32.vlgmr.msra.gmra.mxu1 %vm1158_vm2, %v1155_v10  ;;  %v1378_v35 = vunpack.c.l.bf16 %v4842_v29  ;;  %v1379_v36 = vunpack.c.h.bf16 %v4842_v29 }
  0x3b   : > { %4059 = vmatprep.mubr.msk.f32.mxu1 %vm1158_vm2, %v1156_v11  ;;  %4074 = vmatpush3.msk.msra.mxu1 %vm1177_vm0, %v992_v0 }
  0x3c   : > { %4095 = vmatprep.subr.bf16.mxu1 %v5832_v23  ;;  %4046 = vmatmul.mubr.msk.f32.gmra.mxu0 %vm1038_vm1, %v1035_v14 }
  0x3d   : > { %4048 = vmatprep.mubr.msk.f32.mxu0 %vm1038_vm1, %v1036_v19  ;;  %s5023_s0 = scalar_lea.vmem %s5878_s29, %s4294_s27  ;;  %s1030_s29 = sld [smem:[#allocation3 + %s3783_s4]] }
  0x3e   : > { %4060 = vmatmul.mubr.msk.f32.gmra.mxu1 %vm1158_vm2, %v1157_v18  ;;  %s5063_s30 = scalar_lea.vmem %s5882_s7, %s4294_s27  ;;  %s1031_s27 = sld [smem:[#allocation2]] }
  0x3f   : > { %4075 = vmatprep.mubr.msk.f32.mxu1 %vm1158_vm2, %v1374_v21  ;;  %s5753_s7 = scalar_lea.vmem %s5829_s25, %s4747_s5 }
  0x40   : > { %4049 = vmatmul.mubr.msk.f32.gmra.mxu0 %vm1038_vm1, %v1037_v26 }
  0x41   : > { %4053 = vmatprep.mubr.msk.f32.mxu0 %vm1158_vm2, %v1152_v28 }
  0x42   : > { %4076 = vmatmul.mubr.msk.f32.vlgmr.msra.gmra.mxu1 %vm1158_vm2, %v1375_v27 }
  0x43   : > { %4096 = vmatpush3.bf16.msra.mxu1 %v1786_v30  ;;  %4078 = vmatprep.mubr.msk.f32.mxu1 %vm1158_vm2, %v1376_v31  ;;  %v4573_v30 = vmov 1983009808  }
  0x44   : > { %4097 = vmatprep.subr.bf16.mxu1 %v5832_v23  ;;  %4054 = vmatmul.mubr.msk.f32.vlgmr.msra.gmra.mxu0 %vm1158_vm2, %v1153_v32 }
  0x45   : > { %4063 = vmatpush3.msk.msra.mxu0 %vm1177_vm0, %v4814_v20  ;;  %4064 = vmatprep.mubr.msk.f32.mxu0 %vm1158_vm2, %v1152_v28 }
  0x46   : > { %4079 = vmatmul.mubr.msk.f32.gmra.mxu1 %vm1158_vm2, %v1377_v33  ;;  %4084 = vmatprep.subr.msk.mxu0 %vm1177_vm0, %v4814_v20 }
  0x47   : > { %4098 = vmatpush3.bf16.msra.mxu1 %v4328_v34  ;;  %4081 = vmatprep.mubr.msk.f32.mxu1 %vm1158_vm2, %v1378_v35 }
  0x48   : > { %4099 = vmatprep.subr.bf16.mxu1 %v5832_v23  ;;  %4065 = vmatmul.mubr.msk.f32.vlgmr.msra.gmra.mxu0 %vm1158_vm2, %v1153_v32  ;;  %v1833_v32 = vlaneseq }
  0x49   : > { %4067 = vmatprep.mubr.msk.f32.mxu0 %vm1158_vm2, %v1154_v9  ;;  %4085 = vmatpush3.msk.msra.mxu0 %vm1177_vm0, %v4814_v20 }
  0x4a   : > { %4082 = vmatmul.mubr.msk.f32.gmra.mxu1 %vm1158_vm2, %v1379_v36  ;;  %4109 = vmatprep.subr.bf16.mxu0 %v5832_v23 }
  0x4b   : > { %4100 = vmatpush3.bf16.msra.mxu1 %v4329_v37  ;;  %4105 = vmatprep.mubr.msk.bf16.mxu1 %vm4571_vm5, %v5832_v23 }
  0x4c   : > { %4101 = vmatprep.subr.bf16.mxu1 %v5832_v23  ;;  %4068 = vmatmul.mubr.msk.f32.gmra.mxu0 %vm1158_vm2, %v1155_v10 }
  0x4d   : > { %4070 = vmatprep.mubr.msk.f32.mxu0 %vm1158_vm2, %v1156_v11 }
  0x4f   : > { %4102 = vmatpush3.bf16.msra.mxu1 %v4330_v40  ;;  %v4982_v40 = vshrl.u32 %v1833_v32, 7  ;;  %v1019_v32 = vld [vmem:[%s5023_s0 + $0x10] sm:$0xff] }
  0x50   : > { %4103 = vmatprep.subr.bf16.mxu1 %v5832_v23  ;;  %4071 = vmatmul.mubr.msk.f32.gmra.mxu0 %vm1158_vm2, %v1157_v18 }
  0x51   : > { %4086 = vmatprep.mubr.msk.f32.mxu0 %vm1158_vm2, %v1374_v21 }
  0x53   : > { %4104 = vmatpush3.bf16.msra.mxu1 %v4331_v42 }
  0x54   : > { %4123 = vmatprep.subr.bf16.mxu1 %v5832_v23  ;;  %4087 = vmatmul.mubr.msk.f32.vlgmr.msra.gmra.mxu0 %vm1158_vm2, %v1375_v27 }
  0x55   : > { %4089 = vmatprep.mubr.msk.f32.mxu0 %vm1158_vm2, %v1376_v31  ;;  %4110 = vmatpush3.bf16.msra.mxu0 %v1882_v45  ;;  %v1831_v31 = vunpack.c.l.s4 %v4573_v30 }
  0x56   : > { %4106 = vmatmul.mubr.msk.bf16.vlgmr.msra.gmra.mxu1 %vm1777_vm6, %v1737_v44  ;;  %4111 = vmatprep.subr.bf16.mxu0 %v5832_v23 }
  0x57   : > { %4125 = vmatprep.mubr.msk.bf16.mxu1 %vm4571_vm5, %v5832_v23  ;;  %v1832_v39 = vunpack.c.0.s8 %v1831_v31 }
  0x58   : > { %4090 = vmatmul.mubr.msk.f32.gmra.mxu0 %vm1158_vm2, %v1377_v33 }
  0x59   : > { %4092 = vmatprep.mubr.msk.f32.mxu0 %vm1158_vm2, %v1378_v35  ;;  %4112 = vmatpush3.bf16.msra.mxu0 %v4334_v46  ;;  %v1835_v46 = vsub.s32 %v1832_v39, %v4982_v40 }
  0x5a   : > { %4113 = vmatprep.subr.bf16.mxu0 %v5832_v23 }
  0x5c   : > { %4093 = vmatmul.mubr.msk.f32.gmra.mxu0 %vm1158_vm2, %v1379_v36 }
  0x5d   : > { %4119 = vmatprep.mubr.msk.bf16.mxu0 %vm4571_vm5, %v5832_v23  ;;  %4114 = vmatpush3.bf16.msra.mxu0 %v4335_v47 }
  0x5e   : > { %4115 = vmatprep.subr.bf16.mxu0 %v5832_v23 }
  0x61   : > { %4116 = vmatpush3.bf16.msra.mxu0 %v4336_v48 }
  0x62   : > { %4117 = vmatprep.subr.bf16.mxu0 %v5832_v23 }
  0x65   : > { %4118 = vmatpush3.bf16.msra.mxu0 %v4337_v49 }
  0x66   : > { %4137 = vmatprep.subr.bf16.mxu0 %v5832_v23 }
  0x68   : > { %4120 = vmatmul.mubr.msk.bf16.vlgmr.msra.gmra.mxu0 %vm1777_vm6, %v1838_v51 }
  0x69   : > { %4139 = vmatprep.mubr.msk.bf16.mxu0 %vm4571_vm5, %v5832_v23 }
  0xf7   : > { %v4944_v53 = vpop.f32.mrf.mxu0 }
  0xf9   : > { %v4946_v55 = vpop.f32.mrf.mxu0 }
  0xfa   : > { %v4058_v54 = vpop.f32.mrf.mxu1 }
  0xfc   : > { %v4948_v56 = vpop.f32.mrf.mxu1  ;;  %v4047_v57 = vpop.f32.mrf.mxu0 }
  0xfe   : > { %v4061_v58 = vpop.f32.mrf.mxu1  ;;  %v4950_v59 = vpop.f32.mrf.mxu0 }
 0x100   : > { %v1267_v60 = vpop.f32.mrf.mxu1  ;;  %v4952_v61 = vpop.f32.mrf.mxu0 }
 0x102   : > { %v4077_v62 = vpop.f32.mrf.mxu1  ;;  %v4954_v63 = vpop.f32.mrf.mxu0 }
 0x103   : > { %v1470_v4 = vadd.f32 %v4077_v62, %v4944_v53 }
 0x104   : > { %v1464_v0 = vpop.f32.mrf.mxu1  ;;  %v4055_v1 = vpop.f32.mrf.mxu0 }
 0x105   : > { %v1465_v5 = vadd.f32 %v1464_v0, %v4946_v55  ;;  %v4958_v10 = vsub.f32 %v4055_v1, %v1470_v4 }
 0x106   : > { %v4080_v7 = vpop.f32.mrf.mxu1  ;;  %v1247_v9 = vpop.f32.mrf.mxu0 }
 0x107   : > { %5869 = vst [vmem:[#allocation8_spill] sm:$0xff] %v4958_v10  ;;  %v1480_v11 = vadd.f32 %v4080_v7, %v4047_v57  ;;  %v4960_v14 = vsub.f32 %v1247_v9, %v1465_v5  ;;  %v1601_v27 = vmul.f32 %v4958_v10, %v4958_v10 }
 0x108   : > { %v4962_v15 = vpop.f32.mrf.mxu1  ;;  %v4964_v16 = vpop.f32.mrf.mxu0 }
 0x109   : > { %5870 = vst [vmem:[#allocation9_spill] sm:$0xff] %v4960_v14  ;;  %v1600_v18 = vmul.f32 %v4960_v14, %v4960_v14  ;;  %v4970_v21 = vsub.f32 %v4058_v54, %v1480_v11  ;;  %v1616_v37 = vsel %vm1612_vm7, %v1601_v27, 0.0 }
 0x10a   : > { %v4083_v17 = vpop.f32.mrf.mxu1  ;;  %v4968_v19 = vpop.f32.mrf.mxu0 }
 0x10b   : > { %5871 = vst [vmem:[#allocation10_spill] sm:$0xff] %v4970_v21  ;;  %v1613_v26 = vsel %vm1612_vm7, %v1600_v18, 0.0  ;;  %v1490_v35 = vadd.f32 %v4083_v17, %v4952_v61  ;;  %v1603_v38 = vmul.f32 %v4970_v21, %v4970_v21 }
 0x10c   : > { %v1484_v24 = vpop.f32.mrf.mxu1  ;;  %1614 = vadd.xlane.f32.xlu1 %v1613_v26  ;;  %v4069_v33 = vpop.f32.mrf.mxu0 }
 0x10d   : > { %v1485_v28 = vadd.f32 %v1484_v24, %v4954_v63  ;;  %v4984_v43 = vsub.f32 %v4061_v58, %v1490_v35  ;;  %v1622_v44 = vsel %vm1612_vm7, %v1603_v38, 0.0 }
 0x10e   : > { %v1355_v34 = vpop.f32.mrf.mxu0 }
 0x10f   : > { %v4977_v36 = vsub.f32 %v1267_v60, %v1485_v28  ;;  %v1605_v54 = vmul.f32 %v4984_v43, %v4984_v43 }
 0x110   : > { %1617 = vadd.xlane.f32.xlu1 %v1616_v37  ;;  %v4072_v41 = vpop.f32.mrf.mxu0  ;;  %v1021_v37 = vld [vmem:[%s5023_s0 + $0x20] sm:$0xff] }
 0x111   : > { %5872 = vst [vmem:[#allocation11_spill] sm:$0xff] %v4977_v36  ;;  %v1604_v45 = vmul.f32 %v4977_v36, %v4977_v36  ;;  %v1628_v9 = vsel %vm1612_vm7, %v1605_v54, 0.0 }
 0x112   : > { %v1365_v42 = vpop.f32.mrf.mxu0 }
 0x113   : > { %v1625_v52 = vsel %vm1612_vm7, %v1604_v45, 0.0  ;;  %v1018_v45 = vld [vmem:[%s5023_s0 + $0x8] sm:$0xff] }
 0x114   : > { %1623 = vadd.xlane.f32.xlu1 %v1622_v44  ;;  %v4088_v47 = vpop.f32.mrf.mxu0 }
 0x116   : > { %v4990_v48 = vpop.f32.mrf.mxu1  ;;  %v1559_v50 = vpop.f32.mrf.mxu0 }
 0x117   : > { %5873 = vst [vmem:[#allocation12_spill] sm:$0xff] %v4990_v48  ;;  %v1828_v49 = vpack.c.bf16 %v4990_v48, %v4990_v48 }
 0x118   : > { %v4107_v51 = vpop.f32.mrf.mxu1  ;;  %1626 = vadd.xlane.f32.xlu1 %v1625_v52  ;;  %v4091_v60 = vpop.f32.mrf.mxu0 }
 0x119   : > { %v4997_v58 = vrot.slane %v1828_v49, %v1835_v46  ;;  %v1575_v0 = vadd.f32 %v4091_v60, %v4047_v57 }
 0x11a   : > { %v1825_v62 = vpop.f32.mrf.mxu1  ;;  %v1569_v5 = vpop.f32.mrf.mxu0 }
 0x11b   : > { %v1946_v1 = vrot.slane %v4997_v58, %v1835_v46  ;;  %v5002_v4 = vcombine.high %v4997_v58, %v4997_v58  ;;  %v5005_v11 = vsub.f32 %v4069_v33, %v1575_v0  ;;  %v1570_v17 = vadd.f32 %v1569_v5, %v4950_v59  ;;  %v1020_v33 = vld [vmem:[%s5023_s0 + $0x18] sm:$0xff] }
 0x11c   : > { %v4108_v7 = vpop.f32.mrf.mxu1  ;;  %1629 = vadd.xlane.f32.xlu1 %v1628_v9  ;;  %v4094_v57 = vpop.f32.mrf.mxu0 }
 0x11d   : > { %5874 = vst [vmem:[#allocation13_spill] sm:$0xff] %v5005_v11  ;;  %1947 = vrot.lane.b32.xlu0 %v1946_v1, %s4574_s1  ;;  %v5008_v18 = vsub.f32 %v1355_v34, %v1570_v17  ;;  %v1585_v24 = vadd.f32 %v4094_v57, %v4952_v61  ;;  %v2025_v26 = vrot.slane %v5002_v4, %v1835_v46  ;;  %v1017_v61 = vld [vmem:[%s5023_s0] sm:$0xff]  ;;  %v2113_v1 = vsel %vm1958_vm8, %v4997_v58, 0 }
 0x11e   : > { %v1579_v27 = vpop.f32.mrf.mxu0  ;;  %v2173_v58 = vsel %vm1958_vm8, %v5002_v4, 0  ;;  %v1027_v57 = vld [vmem:[%s5063_s30 + $0x20] sm:$0xff] }
 0x11f   : > { %5875 = vst [vmem:[#allocation14_spill] sm:$0xff] %v5008_v18  ;;  %v5012_v28 = vsub.f32 %v4072_v41, %v1585_v24  ;;  %v1580_v30 = vadd.f32 %v1579_v27, %v4954_v63  ;;  %v1475_v63 = vadd.f32 %v4962_v15, %v4950_v59  ;;  %v1565_v59 = vadd.f32 %v4088_v47, %v4944_v53  ;;  %v1026_v24 = vld [vmem:[%s5063_s30 + $0x18] sm:$0xff] }
 0x120   : > { %v1608_v60 = vmul.f32 %v5008_v18, %v5008_v18 }
 0x121   : > { %5876 = vst [vmem:[#allocation15_spill] sm:$0xff] %v5012_v28  ;;  %2026 = vrot.lane.b32.xlu0 %v2025_v26, %s4574_s1  ;;  %v5015_v31 = vsub.f32 %v1365_v42, %v1580_v30  ;;  %v5033_v35 = vsub.f32 %v4948_v56, %v1475_v63  ;;  %v5041_v15 = vsub.f32 %v4964_v16, %v1565_v59  ;;  %v1022_v16 = vld [vmem:[%s5023_s0 + $0x28] sm:$0xff] }
 0x122   : > { %v1560_v56 = vadd.f32 %v1559_v50, %v4946_v55  ;;  %v1609_v55 = vmul.f32 %v5005_v11, %v5005_v11  ;;  %v1637_v5 = vsel %vm1612_vm7, %v1608_v60, 0.0  ;;  %v1611_v17 = vmul.f32 %v5012_v28, %v5012_v28  ;;  %v1024_v26 = vld [vmem:[%s5063_s30 + $0x8] sm:$0xff] }
 0x123   : > { %5877 = vst [vmem:[#allocation16_spill] sm:$0xff] %v5015_v31  ;;  %5879 = vst [vmem:[#allocation17_spill] sm:$0xff] %v5033_v35  ;;  %v1602_v41 = vmul.f32 %v5033_v35, %v5033_v35  ;;  %v1607_v49 = vmul.f32 %v5041_v15, %v5041_v15  ;;  %v1610_v7 = vmul.f32 %v5015_v31, %v5015_v31 }
 0x124   : > { %5880 = vst [vmem:[#allocation18_spill] sm:$0xff] %v5041_v15  ;;  %v5046_v46 = vsub.f32 %v4968_v19, %v1560_v56  ;;  %v1640_v47 = vsel %vm1612_vm7, %v1609_v55, 0.0  ;;  %v1028_v19 = vld [vmem:[%s5063_s30 + $0x28] sm:$0xff] }
 0x125   : > { %v1619_v44 = vsel %vm1612_vm7, %v1602_v41, 0.0  ;;  %v1634_v51 = vsel %vm1612_vm7, %v1607_v49, 0.0  ;;  %v1643_v9 = vsel %vm1612_vm7, %v1610_v7, 0.0 }
 0x126   : > { %5881 = vst [vmem:[#allocation19_spill] sm:$0xff] %v5046_v46  ;;  %v1606_v52 = vmul.f32 %v5046_v46, %v5046_v46 }
 0x128   : > { %v5030_v34 = vpop.f32.mrf.mxu0  ;;  %v1631_v53 = vsel %vm1612_vm7, %v1606_v52, 0.0 }
 0x129   : > { %v2232_v4 = vpack.c.bf16 %v5030_v34, %v5030_v34 }
 0x12a   : > { %v4121_v38 = vpop.f32.mrf.mxu0 }
 0x12c   : > { %v1921_v39 = vpop.f32.mrf.mxu0 }
 0x12d   : > { %2359 = vperm.xlu1 %4321, %v1017_v61  }
 0x12e   : > { %v4122_v42 = vpop.f32.mrf.mxu0 }
 0x131   : > { %2369 = vperm.xlu1 %4321, %v1019_v32  }
 0x135   : > { %2374 = vperm.xlu1 %4321, %v1020_v33  }
 0x139   : > { %2379 = vperm.xlu1 %4321, %v1021_v37  }
 0x140   : > { %1620 = vadd.xlane.f32.xlu0 %v1619_v44 }
 0x156   : > { %2364 = vperm.xlu0 %4322, %v1018_v45  }
 0x15d   : > { %1635 = vadd.xlane.f32.xlu1 %v1634_v51 }
 0x161   : > { %1632 = vadd.xlane.f32.xlu1 %v1631_v53 }
 0x172   : > { %2384 = vperm.xlu1 %4321, %v1022_v16  }
 0x175   : > { %1641 = vadd.xlane.f32.xlu0 %v1640_v47 }
 0x18b   : > { %3050 = vperm.xlu0 %4322, %v1028_v19  }
 0x18f   : > { %v1948_v50 = vpop.permute.xlu0 %1947 }
 0x190   : > { %v1960_v54 = vsel %vm1958_vm8, %v1948_v50, 0 }
 0x191   : > { %4124 = vmatpush3.bf16.msra.mxu1 %v1960_v54 }
 0x192   : > { %4151 = vmatprep.subr.bf16.mxu1 %v5832_v23 }
 0x193   : > { %v2027_v62 = vpop.permute.xlu0 %2026 }
 0x194   : > { %v2029_v0 = vsel %vm1958_vm8, %v2027_v62, 0  ;;  %4126 = vmatmul.mubr.msk.bf16.vlgmr.msra.gmra.mxu1 %vm1158_vm2, %v4798_v13 }
 0x195   : > { %4138 = vmatpush3.bf16.msra.mxu0 %v2029_v0  ;;  %4152 = vmatpush3.bf16.msra.mxu1 %v2113_v1 }
 0x196   : > { %4165 = vmatprep.subr.bf16.mxu0 %v5832_v23  ;;  %4129 = vmatprep.mubr.msk.bf16.mxu1 %vm4571_vm5, %v5832_v23 }
 0x197   : > { %1638 = vadd.xlane.f32.xlu1 %v1637_v5  ;;  %4179 = vmatprep.subr.bf16.mxu1 %v5832_v23 }
 0x198   : > { %4140 = vmatmul.mubr.msk.bf16.vlgmr.msra.gmra.mxu0 %vm1158_vm2, %v4798_v13  ;;  %v1646_v13 = vsel %vm1612_vm7, %v1611_v17, 0.0 }
 0x199   : > { %4166 = vmatpush3.bf16.msra.mxu0 %v2173_v58  ;;  %4143 = vmatprep.mubr.msk.bf16.mxu0 %vm4571_vm5, %v5832_v23 }
 0x19b   : > { %1644 = vadd.xlane.f32.xlu1 %v1643_v9 }
 0x19c   : > { %4130 = vmatmul.mubr.msk.bf16.gmra.mxu1 %vm1158_vm2, %v4829_v25 }
 0x19d   : > { %4133 = vmatprep.mubr.msk.bf16.mxu1 %vm4571_vm5, %v5832_v23 }
 0x19f   : > { %1647 = vadd.xlane.f32.xlu1 %v1646_v13 }
 0x1a0   : > { %4144 = vmatmul.mubr.msk.bf16.gmra.mxu0 %vm1158_vm2, %v4829_v25  ;;  %v2258_v25 = vsel %vm1177_vm0, %v2232_v4, 0 }
 0x1a1   : > { %4147 = vmatprep.mubr.msk.bf16.mxu0 %vm4571_vm5, %v5832_v23 }
 0x1a4   : > { %4134 = vmatmul.mubr.msk.bf16.gmra.mxu1 %vm1158_vm2, %v4842_v29 }
 0x1a5   : > { %4153 = vmatprep.mubr.msk.bf16.mxu1 %vm4571_vm5, %v5832_v23 }
 0x1a8   : > { %4148 = vmatmul.mubr.msk.bf16.gmra.mxu0 %vm1158_vm2, %v4842_v29  ;;  %v1025_v29 = vld [vmem:[%s5063_s30 + $0x10] sm:$0xff] }
 0x1a9   : > { %4167 = vmatprep.mubr.msk.bf16.mxu0 %vm4571_vm5, %v5832_v23 }
 0x1ac   : > { %4154 = vmatmul.mubr.msk.bf16.vlgmr.msra.gmra.mxu1 %vm1158_vm2, %v4822_v22 }
 0x1ad   : > { %4157 = vmatprep.mubr.msk.bf16.mxu1 %vm4571_vm5, %v5832_v23  ;;  %4180 = vmatpush3.bf16.msra.mxu1 %v2258_v25 }
 0x1b0   : > { %4168 = vmatmul.mubr.msk.bf16.vlgmr.msra.gmra.mxu0 %vm1158_vm2, %v4822_v22  ;;  %3045 = vperm.xlu1 %4321, %v1027_v57   ;;  %v1023_v22 = vld [vmem:[%s5063_s30] sm:$0xff]  ;;  %v2409_v57 = vstv %s1030_s29  ;;  %s3774_s29 = sshll.u32 %s4744_s2, 1 }
 0x1b1   : > { %4171 = vmatprep.mubr.msk.bf16.mxu0 %vm4571_vm5, %v5832_v23  ;;  %s960_s9 = scalar_lea.vmem %s5884_s10, %s3774_s29  ;;  %s4575_s29 = smov 64  }
 0x1b4   : > { %4158 = vmatmul.mubr.msk.bf16.gmra.mxu1 %vm1158_vm2, %v4783_v6  ;;  %3035 = vperm.xlu1 %4321, %v1025_v29  }
 0x1b5   : > { %4161 = vmatprep.mubr.msk.bf16.mxu1 %vm4571_vm5, %v5832_v23 }
 0x1b8   : > { %4172 = vmatmul.mubr.msk.bf16.gmra.mxu0 %vm1158_vm2, %v4783_v6  ;;  %3040 = vperm.xlu1 %4321, %v1026_v24   ;;  %v5148_v6 = vpop.xlane.xlu1 %1614 }
 0x1b9   : > { %4175 = vmatprep.mubr.msk.bf16.mxu0 %vm4571_vm5, %v5832_v23  ;;  %4360 = vrsqrt.f32 %v5148_v6  ;;  %vm1651_vm9 = vcmp.eq.f32.partialorder %v5148_v6, inf  ;;  %vm1653_vm11 = vcmp.eq.f32.partialorder %v5148_v6, 0.0 }
 0x1bc   : > { %4162 = vmatmul.mubr.msk.bf16.gmra.mxu1 %vm1158_vm2, %v4787_v8  ;;  %3025 = vperm.xlu1 %4321, %v1023_v22   ;;  %v5150_v27 = vpop.xlane.xlu1 %1617 }
 0x1bd   : > { %4181 = vmatprep.mubr.msk.bf16.mxu1 %vm4571_vm5, %v5832_v23  ;;  %4362 = vrsqrt.f32 %v5150_v27  ;;  %vm1658_vm10 = vcmp.eq.f32.partialorder %v5150_v27, inf  ;;  %vm1660_vm12 = vcmp.eq.f32.partialorder %v5150_v27, 0.0 }
 0x1c0   : > { %4176 = vmatmul.mubr.msk.bf16.gmra.mxu0 %vm1158_vm2, %v4787_v8  ;;  %3030 = vperm.xlu1 %4321, %v1024_v26   ;;  %v5152_v8 = vpop.xlane.xlu1 %1623  ;;  %v2331_v26 = vsub.s32 0, %v4982_v40 }
 0x1c1   : > { %4364 = vrsqrt.f32 %v5152_v8  ;;  %vm1672_vm13 = vcmp.eq.f32.partialorder %v5152_v8, inf  ;;  %vm1674_vm14 = vcmp.eq.f32.partialorder %v5152_v8, 0.0 }
 0x1c4   : > { %4182 = vmatmul.mubr.msk.bf16.vlgmr.msra.gmra.mxu1 %vm1038_vm1, %v4765_v2  ;;  %v4343_v2 = vld [vmem:[%s5819_s15 + $0x8] sm:$0xff]   ;;  %v5157_v30 = vpop.xlane.xlu1 %1626 }
 0x1c5   : > { %4185 = vmatprep.mubr.msk.bf16.mxu1 %vm4571_vm5, %v5832_v23  ;;  %4193 = vmatprep.subr.bf16.mxu0 %v4343_v2  ;;  %4366 = vrsqrt.f32 %v5157_v30  ;;  %vm1679_vm15 = vcmp.eq.f32.partialorder %v5157_v30, inf  ;;  %vm1681_vm0 = vcmp.eq.f32.partialorder %v5157_v30, 0.0 }
 0x1c6   : > { %4194 = vmatpush3.bf16.msra.mxu0 %v4343_v2  ;;  %v4361_v25 = vpop.eup %4360  ;;  %v1924_v2 = vld [vmem:[%s5817_s13] sm:$0x7] }
 0x1c9   : > { %v5185_v51 = vpop.xlane.xlu0 %1620 }
 0x1ca   : > { %v4363_v29 = vpop.eup %4362  ;;  %vm1665_vm6 = vcmp.eq.f32.partialorder %v5185_v51, inf  ;;  %v1668_v14 = vand.u32 2147483648, %v5185_v51 }
 0x1cc   : > { %4186 = vmatmul.mubr.msk.bf16.gmra.mxu1 %vm1038_vm1, %v4773_v3  ;;  %v4344_v3 = vld [vmem:[%s5819_s15] sm:$0xff]  }
 0x1cd   : > { %4189 = vmatprep.mubr.msk.bf16.mxu1 %vm4571_vm5, %v5832_v23  ;;  %4195 = vmatprep.subr.bf16.mxu0 %v4344_v3 }
 0x1ce   : > { %4196 = vmatpush3.bf16.msra.mxu0 %v4344_v3  ;;  %v2389_v3 = vsub.s32 1, %v4982_v40 }
 0x1cf   : > { %4225 = vmatprep.subr.bf16.mxu0 %v5832_v23 }
 0x1d1   : > { %v5196_v19 = vpop.permute.xlu0 %2364 }
 0x1d4   : > { %4190 = vmatmul.mubr.msk.bf16.gmra.mxu1 %vm1038_vm1, %v4793_v12  ;;  %v5162_v12 = vpop.xlane.xlu1 %1629 }
 0x1d5   : > { %4368 = vrsqrt.f32 %v5162_v12  ;;  %vm1686_vm1 = vcmp.eq.f32.partialorder %v5162_v12, inf  ;;  %vm1688_vm2 = vcmp.eq.f32.partialorder %v5162_v12, 0.0  ;;  %v1689_v18 = vand.u32 2147483648, %v5162_v12 }
 0x1d6   : > { %4370 = vrsqrt.f32 %v5185_v51 }
 0x1d8   : > { %v5165_v61 = vpop.permute.xlu1 %2359 }
 0x1dc   : > { %v5167_v32 = vpop.permute.xlu1 %2369 }
 0x1e0   : > { %v5169_v63 = vpop.permute.xlu1 %2374 }
 0x1e4   : > { %v5173_v34 = vpop.permute.xlu1 %2379 }
 0x1e8   : > { %v5179_v44 = vpop.xlane.xlu1 %1635 }
 0x1e9   : > { %4372 = vrsqrt.f32 %v5179_v44  ;;  %vm1700_vm4 = vcmp.eq.f32.partialorder %v5179_v44, inf  ;;  %vm1702_vm8 = vcmp.eq.f32.partialorder %v5179_v44, 0.0 }
 0x1ec   : > { %v5193_v55 = vpop.xlane.xlu1 %1632 }
 0x1ed   : > { %4374 = vrsqrt.f32 %v5193_v55  ;;  %vm1693_vm3 = vcmp.eq.f32.partialorder %v5193_v55, inf }
 0x1f0   : > { %v5203_v60 = vpop.permute.xlu1 %2384 }
 0x1fe   : > { %v5212_v7 = vpop.xlane.xlu0 %1641 }
 0x1ff   : > { %4376 = vrsqrt.f32 %v5212_v7  ;;  %vm1714_vm7 = vcmp.eq.f32.partialorder %v5212_v7, inf }
 0x220   : > { %v5216_v17 = vpop.xlane.xlu1 %1638 }
 0x221   : > { %4378 = vrsqrt.f32 %v5216_v17 }
 0x254   : > { %v5171_v33 = vpop.f32.mrf.mxu1 }
 0x256   : > { %v4127_v37 = vpop.f32.mrf.mxu1 }
 0x257   : > { %v2413_v37 = vsub.s32 2, %v4982_v40 }
 0x258   : > { %v5175_v38 = vpop.f32.mrf.mxu1  ;;  %v5177_v39 = vpop.f32.mrf.mxu0 }
 0x25a   : > { %v4128_v41 = vpop.f32.mrf.mxu1  ;;  %v4141_v42 = vpop.f32.mrf.mxu0 }
 0x25b   : > { %v1650_v41 = vmul.f32 %v4361_v25, %v5148_v6  ;;  %v2410_v42 = vmul.f32 %v2409_v57, %v1924_v2 }
 0x25c   : > { %v5181_v59 = vpop.f32.mrf.mxu1  ;;  %v5183_v56 = vpop.f32.mrf.mxu0 }
 0x25d   : > { %v5243_v40 = vrot.slane %v2410_v42, %v2413_v37 }
 0x25e   : > { %v4131_v45 = vpop.f32.mrf.mxu1  ;;  %v4142_v49 = vpop.f32.mrf.mxu0 }
 0x260   : > { %v5188_v52 = vpop.f32.mrf.mxu1  ;;  %v5190_v53 = vpop.f32.mrf.mxu0 }
 0x262   : > { %v4132_v16 = vpop.f32.mrf.mxu1  ;;  %v4145_v47 = vpop.f32.mrf.mxu0 }
 0x263   : > { %v1657_v16 = vmul.f32 %v4363_v29, %v5150_v27  ;;  %v5235_v47 = vpop.xlane.xlu1 %1644  ;;  %v1652_v29 = vsel %vm1651_vm9, %v5148_v6, %v1650_v41  ;;  %v1661_v41 = vand.u32 2147483648, %v5150_v27  ;;  %vm1695_vm9 = vcmp.eq.f32.partialorder %v5193_v55, 0.0 }
 0x264   : > { %v5198_v50 = vpop.f32.mrf.mxu1  ;;  %v5200_v54 = vpop.f32.mrf.mxu0  ;;  %4380 = vrsqrt.f32 %v5235_v47 }
 0x265   : > { %v1659_v37 = vsel %vm1658_vm10, %v5150_v27, %v1657_v16  ;;  %v1682_v27 = vand.u32 2147483648, %v5157_v30  ;;  %vm1716_vm10 = vcmp.eq.f32.partialorder %v5212_v7, 0.0 }
 0x266   : > { %v4135_v62 = vpop.f32.mrf.mxu1  ;;  %v4146_v0 = vpop.f32.mrf.mxu0 }
 0x267   : > { %v4365_v62 = vpop.eup %4364  ;;  %v5260_v46 = vpop.xlane.xlu1 %1647 }
 0x268   : > { %v5207_v1 = vpop.f32.mrf.mxu1  ;;  %v5209_v5 = vpop.f32.mrf.mxu0  ;;  %4382 = vrsqrt.f32 %v5260_v46 }
 0x26a   : > { %v4136_v58 = vpop.f32.mrf.mxu1  ;;  %v4149_v9 = vpop.f32.mrf.mxu0 }
 0x26b   : > { %v4367_v9 = vpop.eup %4366 }
 0x26c   : > { %v5219_v13 = vpop.f32.mrf.mxu1  ;;  %v5221_v4 = vpop.f32.mrf.mxu0 }
 0x26e   : > { %v4155_v24 = vpop.f32.mrf.mxu1  ;;  %v4150_v22 = vpop.f32.mrf.mxu0 }
 0x26f   : > { %v5237_v24 = vrot.slane %v1924_v2, %v2331_v26  ;;  %v5239_v22 = vrot.slane %v1924_v2, %v2389_v3  ;;  %v4369_v26 = vpop.eup %4368  ;;  %v1671_v2 = vmul.f32 %v4365_v62, %v5152_v8  ;;  %v1654_v3 = vand.u32 2147483648, %v5148_v6 }
 0x270   : > { %v5230_v45 = vpop.f32.mrf.mxu1  ;;  %v5232_v49 = vpop.f32.mrf.mxu0  ;;  %v1675_v6 = vand.u32 2147483648, %v5152_v8 }
 0x271   : > { %v4371_v42 = vpop.eup %4370  ;;  %v1655_v62 = vsel %vm1653_vm11, %v1654_v3, %v1652_v29  ;;  %v1685_v29 = vmul.f32 %v4369_v26, %v5162_v12  ;;  %v1673_v3 = vsel %vm1672_vm13, %v5152_v8, %v1671_v2  ;;  %v5288_v2 = vmul.f32 %v5239_v22, %v5165_v61 }
 0x272   : > { %v4156_v0 = vpop.f32.mrf.mxu1  ;;  %v4169_v58 = vpop.f32.mrf.mxu0  ;;  %v1664_v11 = vmul.f32 %v4371_v42, %v5185_v51  ;;  %v5281_v31 = vmul.f32 %v5237_v24, %v1655_v62  ;;  %v1676_v61 = vsel %vm1674_vm14, %v1675_v6, %v1673_v3  ;;  %v1703_v8 = vand.u32 2147483648, %v5179_v44 }
 0x273   : > { %v1678_v0 = vmul.f32 %v4367_v9, %v5157_v30  ;;  %v4373_v20 = vpop.eup %4372  ;;  %vm1667_vm11 = vcmp.eq.f32.partialorder %v5185_v51, 0.0  ;;  %vm1721_vm13 = vcmp.eq.f32.partialorder %v5235_v47, inf  ;;  %vm1709_vm14 = vcmp.eq.f32.partialorder %v5216_v17, 0.0 }
 0x274   : > { %v5246_v25 = vpop.f32.mrf.mxu1  ;;  %v5248_v57 = vpop.f32.mrf.mxu0  ;;  %v1699_v48 = vmul.f32 %v4373_v20, %v5179_v44  ;;  %v1666_v6 = vsel %vm1665_vm6, %v5185_v51, %v1664_v11 }
 0x275   : > { %v4375_v16 = vpop.eup %4374  ;;  %v1680_v26 = vsel %vm1679_vm15, %v5157_v30, %v1678_v0  ;;  %v1669_v36 = vsel %vm1667_vm11, %v1668_v14, %v1666_v6  ;;  %vm1723_vm15 = vcmp.eq.f32.partialorder %v5235_v47, 0.0 }
 0x276   : > { %v4159_v58 = vpop.f32.mrf.mxu1  ;;  %v4170_v23 = vpop.f32.mrf.mxu0  ;;  %v1692_v28 = vmul.f32 %v4375_v16, %v5193_v55  ;;  %v1683_v20 = vsel %vm1681_vm0, %v1682_v27, %v1680_v26  ;;  %v1696_v16 = vand.u32 2147483648, %v5193_v55  ;;  %v1701_v30 = vsel %vm1700_vm4, %v5179_v44, %v1699_v48 }
 0x277   : > { %v1662_v58 = vsel %vm1660_vm12, %v1661_v41, %v1659_v37  ;;  %v4377_v15 = vpop.eup %4376  ;;  %v1717_v27 = vand.u32 2147483648, %v5212_v7  ;;  %v2392_v44 = vmul.f32 %v5239_v22, %v5196_v19  ;;  %vm1707_vm12 = vcmp.eq.f32.partialorder %v5216_v17, inf }
 0x278   : > { %v5265_v9 = vpop.f32.mrf.mxu1  ;;  %v5267_v23 = vpop.f32.mrf.mxu0  ;;  %v5293_v42 = vmul.f32 %v5237_v24, %v1662_v58  ;;  %v1694_v3 = vsel %vm1693_vm3, %v5193_v55, %v1692_v28  ;;  %v5334_v28 = vmul.f32 %v5239_v22, %v5169_v63  ;;  %v5347_v63 = vmul.f32 %v5237_v24, %v1683_v20 }
 0x279   : > { %v4379_v26 = vpop.eup %4378  ;;  %v1697_v21 = vsel %vm1695_vm9, %v1696_v16, %v1694_v3  ;;  %v2213_v3 = vadd.f32 %v5248_v57, %v5183_v56  ;;  %vm1728_vm0 = vcmp.eq.f32.partialorder %v5260_v46, inf  ;;  %vm3155_vm3 = vcmask 392192  }
 0x27a   : > { %v4160_v37 = vpop.f32.mrf.mxu1  ;;  %v4173_v41 = vpop.f32.mrf.mxu0  ;;  %v1706_v51 = vmul.f32 %v4379_v26, %v5216_v17  ;;  %v1710_v26 = vand.u32 2147483648, %v5216_v17  ;;  %vm3544_vm4 = vcmask 642048  }
 0x27b   : > { %v1713_v37 = vmul.f32 %v4377_v15, %v5212_v7  ;;  %v1687_v15 = vsel %vm1686_vm1, %v5162_v12, %v1685_v29  ;;  %v5321_v29 = vmul.f32 %v5239_v22, %v5167_v32  ;;  %v4381_v48 = vpop.eup %4380  ;;  %v5338_v32 = vmul.f32 %v5237_v24, %v1676_v61 }
 0x27c   : > { %v5296_v41 = vpop.f32.mrf.mxu1  ;;  %v5298_v62 = vpop.f32.mrf.mxu0  ;;  %v1690_v10 = vsel %vm1688_vm2, %v1689_v18, %v1687_v15  ;;  %v2150_v61 = vadd.f32 %v5219_v13, %v5171_v33  ;;  %v2210_v18 = vadd.f32 %v5232_v49, %v5177_v39  ;;  %v5356_v12 = vmul.f32 %v5239_v22, %v5173_v34 }
 0x27d   : > { %v1715_v11 = vsel %vm1714_vm7, %v5212_v7, %v1713_v37  ;;  %v1704_v7 = vsel %vm1702_vm8, %v1703_v8, %v1701_v30  ;;  %v1720_v14 = vmul.f32 %v4381_v48, %v5235_v47  ;;  %v5364_v15 = vmul.f32 %v5237_v24, %v1690_v10  ;;  %v4383_v6 = vpop.eup %4382 }
 0x27e   : > { %v4163_v0 = vpop.f32.mrf.mxu1  ;;  %v4174_v58 = vpop.f32.mrf.mxu0  ;;  %v2340_v39 = vmul.f32 %v5237_v24, %v1704_v7  ;;  %v2335_v49 = vmul.f32 %v5237_v24, %v1669_v36  ;;  %v2339_v34 = vmul.f32 %v5237_v24, %v1697_v21  ;;  %v2153_v10 = vadd.f32 %v5230_v45, %v5175_v38 }
 0x27f   : > { %v1708_v21 = vsel %vm1707_vm12, %v5216_v17, %v1706_v51  ;;  %v1724_v38 = vand.u32 2147483648, %v5235_v47  ;;  %v1727_v56 = vmul.f32 %v4383_v6, %v5260_v46  ;;  %vm1730_vm1 = vcmp.eq.f32.partialorder %v5260_v46, 0.0 }
 0x280   : > { %v5323_v0 = vpop.f32.mrf.mxu1  ;;  %v5325_v58 = vpop.f32.mrf.mxu0  ;;  %v1711_v57 = vsel %vm1709_vm14, %v1710_v26, %v1708_v21  ;;  %vm2559_vm2 = vcmask 261120  }
 0x282   : > { %v4164_v35 = vpop.f32.mrf.mxu1  ;;  %v4177_v37 = vpop.f32.mrf.mxu0 }
 0x283   : > { %v1718_v35 = vsel %vm1716_vm10, %v1717_v27, %v1715_v11  ;;  %v1722_v11 = vsel %vm1721_vm13, %v5235_v47, %v1720_v14  ;;  %v2218_v14 = vadd.f32 %v5267_v23, %v5190_v53  ;;  %v1729_v53 = vsel %vm1728_vm0, %v5260_v46, %v1727_v56 }
 0x284   : > { %v2294_v55 = vpop.f32.mrf.mxu1  ;;  %v5361_v20 = vpop.f32.mrf.mxu0  ;;  %v5371_v19 = vmul.f32 %v5237_v24, %v1718_v35  ;;  %v2158_v35 = vadd.f32 %v5246_v25, %v5181_v59  ;;  %v2161_v25 = vadd.f32 %v5265_v9, %v5188_v52  ;;  %v2166_v9 = vadd.f32 %v5296_v41, %v5198_v50 }
 0x285   : > { %v2317_v33 = vadd.f32 %v2294_v55, %v2150_v61  ;;  %v2323_v13 = vadd.f32 %v2294_v55, %v2210_v18  ;;  %v1725_v18 = vsel %vm1723_vm15, %v1724_v38, %v1722_v11 }
 0x286   : > { %v4183_v16 = vpop.f32.mrf.mxu1  ;;  %v4178_v8 = vpop.f32.mrf.mxu0  ;;  %v2343_v59 = vmul.f32 %v5237_v24, %v1725_v18 }
 0x287   : > { %v2345_v36 = vadd.f32 %v5281_v31, %v2317_v33  ;;  %v2351_v30 = vadd.f32 %v2339_v34, %v2323_v13  ;;  %v5389_v31 = vld [vmem:[%s5818_s14] ss:$0 sm:$0xff]  ;;  %v2341_v34 = vmul.f32 %v5237_v24, %v1711_v57 }
 0x288   : > { %v2297_v27 = vpop.f32.mrf.mxu1 }
 0x289   : > { %v2397_v48 = vadd.f32 %v5288_v2, %v2345_v36  ;;  %v2318_v7 = vadd.f32 %v2297_v27, %v2153_v10  ;;  %v2324_v37 = vadd.f32 %v2297_v27, %v2213_v3  ;;  %v2403_v55 = vadd.f32 %v5288_v2, %v2351_v30 }
 0x28a   : > { %v4184_v45 = vpop.f32.mrf.mxu1  ;;  %v2221_v10 = vadd.f32 %v5298_v62, %v5200_v54 }
 0x28b   : > { %v2415_v17 = vadd.f32 %v5243_v40, %v2397_v48  ;;  %v2346_v51 = vadd.f32 %v5293_v42, %v2318_v7  ;;  %v2352_v61 = vadd.f32 %v2340_v39, %v2324_v37  ;;  %v1731_v42 = vand.u32 2147483648, %v5260_v46 }
 0x28c   : > { %v2302_v33 = vpop.f32.mrf.mxu1  ;;  %v2421_v3 = vadd.f32 %v5243_v40, %v2403_v55  ;;  %v2169_v45 = vadd.f32 %v5323_v0, %v5207_v1  ;;  %v2229_v1 = vadd.f32 %v5361_v20, %v5221_v4 }
 0x28d   : > { %v5402_v47 = vadd.f32 %v5389_v31, %v2415_v17  ;;  %v2398_v13 = vadd.f32 %v2392_v44, %v2346_v51  ;;  %v2319_v39 = vadd.f32 %v2302_v33, %v2158_v35  ;;  %v2325_v16 = vadd.f32 %v2302_v33, %v2218_v14 }
 0x28e   : > { %v4187_v8 = vpop.f32.mrf.mxu1  ;;  %v2404_v2 = vadd.f32 %v2392_v44, %v2352_v61  ;;  %v1732_v52 = vsel %vm1730_vm1, %v1731_v42, %v1729_v53  ;;  %v5432_v46 = vadd.f32 %v5389_v31, %v2421_v3 }
 0x28f   : > { %v3855_v23 = vmul.f32 -1.442695, %v5402_v47  ;;  %v2416_v6 = vadd.f32 %v5243_v40, %v2398_v13  ;;  %v2347_v36 = vadd.f32 %v2335_v49, %v2319_v39  ;;  %v2353_v21 = vadd.f32 %v2341_v34, %v2325_v16 }
 0x290   : > { %v2305_v30 = vpop.f32.mrf.mxu1  ;;  %v2226_v49 = vadd.f32 %v5325_v58, %v5209_v5  ;;  %v2422_v48 = vadd.f32 %v5243_v40, %v2404_v2  ;;  %v2344_v51 = vmul.f32 %v5237_v24, %v1732_v52  ;;  %v3861_v14 = vmul.f32 -1.442695, %v5432_v46 }
 0x291   : > { %4384 = vpow2.f32 %v3855_v23  ;;  %v5418_v27 = vadd.f32 %v5389_v31, %v2416_v6  ;;  %v2320_v26 = vadd.f32 %v2305_v30, %v2161_v25  ;;  %v2399_v44 = vadd.f32 %v5321_v29, %v2347_v36 }
 0x292   : > { %v2405_v54 = vadd.f32 %v5321_v29, %v2353_v21  ;;  %v2326_v62 = vadd.f32 %v2305_v30, %v2221_v10  ;;  %v4188_v11 = vpop.f32.mrf.mxu1  ;;  %v5446_v61 = vadd.f32 %v5389_v31, %v2422_v48 }
 0x293   : > { %v3856_v7 = vmul.f32 -1.442695, %v5418_v27  ;;  %v2348_v37 = vadd.f32 %v5338_v32, %v2320_v26  ;;  %v2417_v50 = vadd.f32 %v5243_v40, %v2399_v44 }
 0x294   : > { %v2423_v41 = vadd.f32 %v5243_v40, %v2405_v54  ;;  %v2354_v29 = vadd.f32 %v5371_v19, %v2326_v62  ;;  %v2310_v38 = vpop.f32.mrf.mxu1  ;;  %v3862_v39 = vmul.f32 -1.442695, %v5446_v61 }
 0x295   : > { %4386 = vpow2.f32 %v3856_v7  ;;  %v2400_v56 = vadd.f32 %v5334_v28, %v2348_v37  ;;  %v2321_v5 = vadd.f32 %v2310_v38, %v2166_v9  ;;  %v2327_v58 = vadd.f32 %v2310_v38, %v2226_v49 }
 0x296   : > { %v5441_v32 = vadd.f32 %v5389_v31, %v2417_v50  ;;  %v2406_v57 = vadd.f32 %v5334_v28, %v2354_v29  ;;  %v4191_v17 = vpop.f32.mrf.mxu1  ;;  %v5456_v24 = vadd.f32 %v5389_v31, %v2423_v41 }
 0x297   : > { %v2418_v19 = vadd.f32 %v5243_v40, %v2400_v56  ;;  %v2349_v18 = vadd.f32 %v5347_v63, %v2321_v5  ;;  %v2355_v35 = vadd.f32 %v2343_v59, %v2327_v58  ;;  %v2396_v59 = vmul.f32 %v5239_v22, %v5203_v60 }
 0x298   : > { %v3857_v0 = vmul.f32 -1.442695, %v5441_v32  ;;  %v2424_v28 = vadd.f32 %v5243_v40, %v2406_v57  ;;  %v2313_v55 = vpop.f32.mrf.mxu1  ;;  %v3863_v2 = vmul.f32 -1.442695, %v5456_v24 }
 0x299   : > { %v5459_v33 = vadd.f32 %v5389_v31, %v2418_v19  ;;  %v2401_v13 = vadd.f32 %v5356_v12, %v2349_v18  ;;  %v2322_v63 = vadd.f32 %v2313_v55, %v2169_v45  ;;  %v2407_v4 = vadd.f32 %v5356_v12, %v2355_v35 }
 0x29a   : > { %4388 = vpow2.f32 %v3857_v0  ;;  %v5463_v34 = vadd.f32 %v5389_v31, %v2424_v28  ;;  %v2328_v20 = vadd.f32 %v2313_v55, %v2229_v1  ;;  %v4192_v42 = vpop.f32.mrf.mxu1 }
 0x29b   : > { %v3858_v16 = vmul.f32 -1.442695, %v5459_v33  ;;  %v2419_v8 = vadd.f32 %v5243_v40, %v2401_v13  ;;  %v2350_v25 = vadd.f32 %v5364_v15, %v2322_v63  ;;  %v2425_v10 = vadd.f32 %v5243_v40, %v2407_v4 }
 0x29c   : > { %v3864_v53 = vmul.f32 -1.442695, %v5463_v34  ;;  %v2356_v23 = vadd.f32 %v2344_v51, %v2328_v20 }
 0x29d   : > { %4390 = vpow2.f32 %v3858_v16  ;;  %v5475_v12 = vadd.f32 %v5389_v31, %v2419_v8  ;;  %v2402_v3 = vadd.f32 %v2396_v59, %v2350_v25  ;;  %v5482_v26 = vadd.f32 %v5389_v31, %v2425_v10 }
 0x29e   : > { %v4385_v6 = vpop.eup %4384  ;;  %4392 = vpow2.f32 %v3861_v14  ;;  %v2408_v36 = vadd.f32 %v2396_v59, %v2356_v23 }
 0x29f   : > { %v2482_v21 = vadd.f32 1.0, %v4385_v6  ;;  %4394 = vpow2.f32 %v3862_v39  ;;  %v3859_v60 = vmul.f32 -1.442695, %v5475_v12  ;;  %v2420_v22 = vadd.f32 %v5243_v40, %v2402_v3 }
 0x2a0   : > { %4396 = vpow2.f32 %v3864_v53  ;;  %v2426_v15 = vadd.f32 %v5243_v40, %v2408_v36  ;;  %v3865_v11 = vmul.f32 -1.442695, %v5482_v26 }
 0x2a1   : > { %4398 = vpow2.f32 %v3863_v2  ;;  %v2439_v52 = vadd.f32 %v5389_v31, %v2420_v22  ;;  %v3867_v22 = vld [vmem:[%s5820_s16] ss:$0 sm:$0xff] }
 0x2a2   : > { %v4387_v30 = vpop.eup %4386  ;;  %4400 = vrcp.f32 %v2482_v21  ;;  %v5486_v9 = vadd.f32 %v5389_v31, %v2426_v15 }
 0x2a3   : > { %v2483_v44 = vadd.f32 1.0, %v4387_v30  ;;  %4402 = vpow2.f32 %v3859_v60  ;;  %v3860_v54 = vmul.f32 -1.442695, %v2439_v52  ;;  %v4346_v60 = vld [vmem:[%s5821_s17] sm:$0xff]  }
 0x2a4   : > { %v3866_v62 = vmul.f32 -1.442695, %v5486_v9 }
 0x2a5   : > { %4404 = vrcp.f32 %v2483_v44 }
 0x2a6   : > { %4406 = vpow2.f32 %v3860_v54 }
 0x2a7   : > { %v4389_v40 = vpop.eup %4388  ;;  %4408 = vpow2.f32 %v3866_v62 }
 0x2a8   : > { %v2484_v49 = vadd.f32 1.0, %v4389_v40  ;;  %4410 = vpow2.f32 %v3865_v11 }
 0x2aa   : > { %v4391_v48 = vpop.eup %4390  ;;  %4412 = vrcp.f32 %v2484_v49 }
 0x2ab   : > { %v4393_v7 = vpop.eup %4392  ;;  %v2485_v37 = vadd.f32 1.0, %v4391_v48 }
 0x2ac   : > { %v4395_v50 = vpop.eup %4394  ;;  %v2488_v29 = vadd.f32 1.0, %v4393_v7 }
 0x2ad   : > { %v4397_v31 = vpop.eup %4396  ;;  %4414 = vrcp.f32 %v2485_v37  ;;  %v2489_v56 = vadd.f32 1.0, %v4395_v50 }
 0x2ae   : > { %v4399_v41 = vpop.eup %4398  ;;  %v2491_v58 = vadd.f32 1.0, %v4397_v31  ;;  %4416 = vrcp.f32 %v2488_v29 }
 0x2af   : > { %v4401_v38 = vpop.eup %4400  ;;  %v2490_v17 = vadd.f32 1.0, %v4399_v41  ;;  %4418 = vrcp.f32 %v2489_v56 }
 0x2b0   : > { %v4403_v5 = vpop.eup %4402  ;;  %v2518_v51 = vmul.f32 %v4401_v38, %v5402_v47  ;;  %4420 = vrcp.f32 %v2491_v58 }
 0x2b1   : > { %v2486_v45 = vadd.f32 1.0, %v4403_v5 }
 0x2b2   : > { %v4405_v57 = vpop.eup %4404 }
 0x2b3   : > { %v2519_v19 = vmul.f32 %v4405_v57, %v5418_v27  ;;  %v4407_v18 = vpop.eup %4406  ;;  %4422 = vrcp.f32 %v2486_v45 }
 0x2b4   : > { %v4409_v35 = vpop.eup %4408  ;;  %v2487_v14 = vadd.f32 1.0, %v4407_v18  ;;  %4424 = vrcp.f32 %v2490_v17 }
 0x2b5   : > { %v2530_v1 = vpack.c.bf16 %v2519_v19, %v2518_v51  ;;  %v4411_v0 = vpop.eup %4410  ;;  %v2493_v55 = vadd.f32 1.0, %v4409_v35 }
 0x2b6   : > { %4426 = vrcp.f32 %v2487_v14  ;;  %v2492_v63 = vadd.f32 1.0, %v4411_v0 }
 0x2b7   : > { %4197 = vmatprep.mubr.msk.bf16.mxu0 %vm2559_vm2, %v2530_v1  ;;  %v4413_v28 = vpop.eup %4412  ;;  %4428 = vrcp.f32 %v2493_v55 }
 0x2b8   : > { %v2520_v47 = vmul.f32 %v4413_v28, %v5441_v32  ;;  %4430 = vrcp.f32 %v2492_v63 }
 0x2ba   : > { %v4415_v13 = vpop.eup %4414 }
 0x2bb   : > { %v2521_v27 = vmul.f32 %v4415_v13, %v5459_v33  ;;  %v4417_v20 = vpop.eup %4416 }
 0x2bc   : > { %v4419_v42 = vpop.eup %4418  ;;  %v2524_v33 = vmul.f32 %v4417_v20, %v5432_v46  ;;  %v5883_v46 = vmov 0.0  }
 0x2bd   : > { %v2531_v4 = vpack.c.bf16 %v2521_v27, %v2520_v47  ;;  %v4421_v39 = vpop.eup %4420  ;;  %v2525_v53 = vmul.f32 %v4419_v42, %v5446_v61 }
 0x2be   : > { %v2527_v32 = vmul.f32 %v4421_v39, %v5463_v34 }
 0x2bf   : > { %4198 = vmatmul.mubr.msk.bf16.vlgmr.msra.gmra.mxu0 %vm2559_vm2, %v2531_v4  ;;  %v2533_v10 = vpack.c.bf16 %v2525_v53, %v2524_v33 }
 0x2c0   : > { %v4423_v16 = vpop.eup %4422 }
 0x2c1   : > { %v4425_v8 = vpop.eup %4424  ;;  %v2522_v25 = vmul.f32 %v4423_v16, %v5475_v12 }
 0x2c2   : > { %v2526_v6 = vmul.f32 %v4425_v8, %v5456_v24  ;;  %v4345_v24 = vld [vmem:[%s5821_s17 + $0x8] sm:$0xff]  }
 0x2c3   : > { %v4427_v59 = vpop.eup %4426  ;;  %4209 = vmatprep.subr.bf16.mxu1 %v4345_v24 }
 0x2c4   : > { %v2523_v23 = vmul.f32 %v4427_v59, %v2439_v52  ;;  %v4429_v3 = vpop.eup %4428  ;;  %v2534_v36 = vpack.c.bf16 %v2527_v32, %v2526_v6  ;;  %4210 = vmatpush3.bf16.msra.mxu1 %v4345_v24 }
 0x2c5   : > { %v4431_v21 = vpop.eup %4430  ;;  %v2529_v61 = vmul.f32 %v4429_v3, %v5486_v9  ;;  %4211 = vmatprep.subr.bf16.mxu1 %v4346_v60 }
 0x2c6   : > { %v2532_v2 = vpack.c.bf16 %v2523_v23, %v2522_v25  ;;  %v2528_v12 = vmul.f32 %v4431_v21, %v5482_v26 }
 0x2c8   : > { %4201 = vmatprep.mubr.msk.bf16.mxu0 %vm2559_vm2, %v2532_v2  ;;  %v2535_v34 = vpack.c.bf16 %v2529_v61, %v2528_v12  ;;  %4212 = vmatpush3.bf16.msra.mxu1 %v4346_v60 }
 0x2c9   : > { %4202 = vmatmul.mubr.msk.bf16.gmra.mxu0 %vm2559_vm2, %v2533_v10  ;;  %4245 = vmatprep.subr.mxu1 %v5883_v46  ;;  %v5555_v10 = vpop.permute.xlu1 %3045 }
 0x2ca   : > { %4205 = vmatprep.mubr.msk.bf16.mxu0 %vm2559_vm2, %v2534_v36 }
 0x2d1   : > { %4206 = vmatmul.mubr.msk.bf16.gmra.mxu0 %vm2559_vm2, %v2535_v34 }
 0x2d2   : > { %4231 = vmatprep.mubr.msk.bf16.mxu0 %vm4571_vm5, %v5883_v46 }
 0x37f   : > { %v4199_v15 = vpop.f32.mrf.mxu0 }
 0x380   : > { %v5519_v30 = vadd.f32 %v4199_v15, %v3867_v22  ;;  %v5558_v15 = vpop.permute.xlu1 %3035 }
 0x381   : > { %v2612_v26 = vpop.f32.mrf.mxu0 }
 0x382   : > { %v3878_v52 = vmul.f32 -1.442695, %v5519_v30  ;;  %v5522_v9 = vadd.f32 %v3867_v22, %v2612_v26 }
 0x383   : > { %v4200_v44 = vpop.f32.mrf.mxu0 }
 0x384   : > { %4432 = vpow2.f32 %v3878_v52  ;;  %v3876_v54 = vmul.f32 -1.442695, %v5522_v9  ;;  %v5525_v62 = vadd.f32 %v4200_v44, %v3867_v22 }
 0x385   : > { %v2615_v11 = vpop.f32.mrf.mxu0 }
 0x386   : > { %4434 = vpow2.f32 %v3876_v54  ;;  %v3879_v40 = vmul.f32 -1.442695, %v5525_v62  ;;  %v5528_v49 = vadd.f32 %v3867_v22, %v2615_v11 }
 0x388   : > { %4436 = vpow2.f32 %v3879_v40  ;;  %v3877_v48 = vmul.f32 -1.442695, %v5528_v49 }
 0x389   : > { %v4203_v7 = vpop.f32.mrf.mxu0 }
 0x38a   : > { %4438 = vpow2.f32 %v3877_v48  ;;  %v5531_v37 = vadd.f32 %v4203_v7, %v3867_v22 }
 0x38b   : > { %v2628_v50 = vpop.f32.mrf.mxu0 }
 0x38c   : > { %v3882_v31 = vmul.f32 -1.442695, %v5531_v37  ;;  %v5534_v41 = vadd.f32 %v3867_v22, %v2628_v50 }
 0x38d   : > { %v4204_v29 = vpop.f32.mrf.mxu0 }
 0x38e   : > { %v3880_v38 = vmul.f32 -1.442695, %v5534_v41  ;;  %v5537_v56 = vadd.f32 %v4204_v29, %v3867_v22  ;;  %4440 = vpow2.f32 %v3882_v31 }
 0x38f   : > { %v2631_v5 = vpop.f32.mrf.mxu0 }
 0x390   : > { %4442 = vpow2.f32 %v3880_v38  ;;  %v3883_v45 = vmul.f32 -1.442695, %v5537_v56  ;;  %v5540_v57 = vadd.f32 %v3867_v22, %v2631_v5 }
 0x391   : > { %v4433_v58 = vpop.eup %4432  ;;  %v4207_v51 = vpop.f32.mrf.mxu0 }
 0x392   : > { %v2697_v17 = vadd.f32 1.0, %v4433_v58  ;;  %4444 = vpow2.f32 %v3883_v45  ;;  %v3881_v18 = vmul.f32 -1.442695, %v5540_v57  ;;  %v5543_v35 = vadd.f32 %v4207_v51, %v3867_v22  ;;  %v3051_v45 = vpop.permute.xlu0 %3050 }
 0x393   : > { %v4435_v19 = vpop.eup %4434  ;;  %v2644_v1 = vpop.f32.mrf.mxu0 }
 0x394   : > { %4446 = vrcp.f32 %v2697_v17  ;;  %v2695_v14 = vadd.f32 1.0, %v4435_v19  ;;  %v3886_v28 = vmul.f32 -1.442695, %v5543_v35  ;;  %v5546_v55 = vadd.f32 %v3867_v22, %v2644_v1 }
 0x395   : > { %v4437_v0 = vpop.eup %4436  ;;  %4448 = vpow2.f32 %v3881_v18  ;;  %v4208_v63 = vpop.f32.mrf.mxu0 }
 0x396   : > { %4450 = vrcp.f32 %v2695_v14  ;;  %v2698_v13 = vadd.f32 1.0, %v4437_v0  ;;  %v3884_v27 = vmul.f32 -1.442695, %v5546_v55  ;;  %v5549_v4 = vadd.f32 %v4208_v63, %v3867_v22 }
 0x397   : > { %v4439_v47 = vpop.eup %4438  ;;  %4452 = vpow2.f32 %v3886_v28  ;;  %v2647_v42 = vpop.f32.mrf.mxu0 }
 0x398   : > { %4454 = vrcp.f32 %v2698_v13  ;;  %v2696_v20 = vadd.f32 1.0, %v4439_v47  ;;  %v3887_v39 = vmul.f32 -1.442695, %v5549_v4  ;;  %v5552_v16 = vadd.f32 %v3867_v22, %v2647_v42 }
 0x399   : > { %4456 = vpow2.f32 %v3884_v27 }
 0x39a   : > { %4458 = vrcp.f32 %v2696_v20  ;;  %v3885_v8 = vmul.f32 -1.442695, %v5552_v16 }
 0x39b   : > { %4460 = vpow2.f32 %v3887_v39  ;;  %v4441_v59 = vpop.eup %4440 }
 0x39c   : > { %4462 = vpow2.f32 %v3885_v8  ;;  %v2701_v32 = vadd.f32 1.0, %v4441_v59 }
 0x39d   : > { %v4443_v53 = vpop.eup %4442 }
 0x39e   : > { %v2699_v25 = vadd.f32 1.0, %v4443_v53 }
 0x39f   : > { %v4445_v23 = vpop.eup %4444 }
 0x3a0   : > { %4464 = vrcp.f32 %v2699_v25  ;;  %v2702_v2 = vadd.f32 1.0, %v4445_v23 }
 0x3a1   : > { %v4447_v33 = vpop.eup %4446 }
 0x3a2   : > { %v4449_v6 = vpop.eup %4448  ;;  %4466 = vrcp.f32 %v2702_v2  ;;  %v2733_v54 = vmul.f32 %v4447_v33, %v5519_v30 }
 0x3a3   : > { %v4451_v3 = vpop.eup %4450  ;;  %v2700_v36 = vadd.f32 1.0, %v4449_v6  ;;  %4468 = vrcp.f32 %v2701_v32 }
 0x3a4   : > { %v4453_v21 = vpop.eup %4452  ;;  %v2731_v26 = vmul.f32 %v4451_v3, %v5522_v9  ;;  %v3041_v9 = vpop.permute.xlu1 %3040 }
 0x3a5   : > { %v4455_v61 = vpop.eup %4454  ;;  %4470 = vrcp.f32 %v2700_v36  ;;  %v2705_v44 = vadd.f32 1.0, %v4453_v21 }
 0x3a6   : > { %v4457_v12 = vpop.eup %4456  ;;  %v2734_v24 = vmul.f32 %v4455_v61, %v5525_v62  ;;  %v3888_v61 = vld [vmem:[%s5822_s18] ss:$0 sm:$0xff] }
 0x3a7   : > { %v4459_v34 = vpop.eup %4458  ;;  %v2703_v60 = vadd.f32 1.0, %v4457_v12 }
 0x3a8   : > { %v4461_v22 = vpop.eup %4460  ;;  %v2732_v52 = vmul.f32 %v4459_v34, %v5528_v49  ;;  %v2744_v7 = vpack.c.bf16 %v2734_v24, %v2733_v54  ;;  %v3026_v58 = vpop.permute.xlu1 %3025  ;;  %v3056_v0 = vmul.f32 %v3041_v9, %v2734_v24 }
 0x3a9   : > { %v2706_v11 = vadd.f32 1.0, %v4461_v22  ;;  %v4463_v40 = vpop.eup %4462  ;;  %4472 = vrcp.f32 %v2703_v60  ;;  %v3053_v8 = vmul.f32 %v3026_v58, %v2731_v26 }
 0x3aa   : > { %v2743_v48 = vpack.c.bf16 %v2732_v52, %v2731_v26  ;;  %v2704_v50 = vadd.f32 1.0, %v4463_v40 }
 0x3ab   : > { %4474 = vrcp.f32 %v2706_v11 }
 0x3ac   : > { %4476 = vrcp.f32 %v2705_v44  ;;  %4213 = vmatprep.mubr.msk.bf16.mxu1 %vm2559_vm2, %v2743_v48 }
 0x3ad   : > { %4478 = vrcp.f32 %v2704_v50  ;;  %4214 = vmatmul.mubr.msk.bf16.vlgmr.msra.gmra.mxu1 %vm2559_vm2, %v2744_v7  ;;  %v4465_v62 = vpop.eup %4464 }
 0x3ae   : > { %v2735_v29 = vmul.f32 %v4465_v62, %v5534_v41 }
 0x3af   : > { %v4467_v31 = vpop.eup %4466 }
 0x3b0   : > { %v4469_v49 = vpop.eup %4468  ;;  %v2738_v38 = vmul.f32 %v4467_v31, %v5537_v56  ;;  %v3057_v51 = vmul.f32 %v5555_v10, %v2735_v29 }
 0x3b1   : > { %v2737_v17 = vmul.f32 %v4469_v49, %v5531_v37  ;;  %v3031_v37 = vpop.permute.xlu1 %3030 }
 0x3b2   : > { %v4471_v30 = vpop.eup %4470  ;;  %v3054_v27 = vmul.f32 %v3031_v37, %v2732_v52  ;;  %v3060_v33 = vmul.f32 %v3031_v37, %v2738_v38 }
 0x3b3   : > { %v2736_v5 = vmul.f32 %v4471_v30, %v5540_v57  ;;  %v2746_v14 = vpack.c.bf16 %v2738_v38, %v2737_v17  ;;  %v3055_v57 = vmul.f32 %v5558_v15, %v2733_v54  ;;  %v3059_v6 = vmul.f32 %v3026_v58, %v2737_v17 }
 0x3b5   : > { %v2745_v19 = vpack.c.bf16 %v2736_v5, %v2735_v29  ;;  %v3058_v18 = vmul.f32 %v3051_v45, %v2736_v5  ;;  %v3150_v47 = vpack.c.bf16 %v3056_v0, %v3055_v57 }
 0x3b6   : > { %v4473_v1 = vpop.eup %4472 }
 0x3b7   : > { %v3151_v28 = vpack.c.bf16 %v3058_v18, %v3057_v51  ;;  %4217 = vmatprep.mubr.msk.bf16.mxu1 %vm2559_vm2, %v2745_v19  ;;  %v2739_v20 = vmul.f32 %v4473_v1, %v5546_v55 }
 0x3b8   : > { %v4475_v41 = vpop.eup %4474  ;;  %4218 = vmatmul.mubr.msk.bf16.gmra.mxu1 %vm2559_vm2, %v2746_v14 }
 0x3b9   : > { %v4477_v56 = vpop.eup %4476  ;;  %4226 = vmatpush3.bf16.msra.mxu0 %v3151_v28  ;;  %v2742_v63 = vmul.f32 %v4475_v41, %v5549_v4  ;;  %v3149_v4 = vpack.c.bf16 %v3054_v27, %v3053_v8  ;;  %v3061_v32 = vmul.f32 %v5558_v15, %v2739_v20 }
 0x3ba   : > { %v4479_v13 = vpop.eup %4478  ;;  %4227 = vmatprep.subr.bf16.mxu0 %v5883_v46  ;;  %v2741_v39 = vmul.f32 %v4477_v56, %v5543_v35  ;;  %v5586_v35 = vld [vmem:[%s960_s9] sm:$0x3] }
 0x3bb   : > { %v2740_v42 = vmul.f32 %v4479_v13, %v5552_v16  ;;  %v3064_v25 = vmul.f32 %v3051_v45, %v2742_v63 }
 0x3bc   : > { %v2748_v53 = vpack.c.bf16 %v2742_v63, %v2741_v39  ;;  %v3063_v55 = vmul.f32 %v5555_v10, %v2741_v39  ;;  %v3152_v10 = vpack.c.bf16 %v3060_v33, %v3059_v6 }
 0x3bd   : > { %v2747_v59 = vpack.c.bf16 %v2740_v42, %v2739_v20  ;;  %4228 = vmatpush3.bf16.msra.mxu0 %v3150_v47  ;;  %v3062_v23 = vmul.f32 %v3041_v9, %v2740_v42 }
 0x3be   : > { %4229 = vmatprep.subr.bf16.mxu0 %v5883_v46  ;;  %v3154_v16 = vpack.c.bf16 %v3064_v25, %v3063_v55 }
 0x3bf   : > { %4221 = vmatprep.mubr.msk.bf16.mxu1 %vm2559_vm2, %v2747_v59  ;;  %v3153_v2 = vpack.c.bf16 %v3062_v23, %v3061_v32 }
 0x3c0   : > { %4222 = vmatmul.mubr.msk.bf16.gmra.mxu1 %vm2559_vm2, %v2748_v53 }
 0x3c1   : > { %4230 = vmatpush3.bf16.msra.mxu0 %v3149_v4  ;;  %4257 = vmatprep.mubr.msk.f32.mxu1 %vm4571_vm5, %v5883_v46 }
 0x3c2   : > { %4235 = vmatprep.subr.bf16.mxu0 %v5883_v46 }
 0x3c4   : > { %4232 = vmatmul.mubr.msk.bf16.vlgmr.msra.gmra.mxu0 %vm3155_vm3, %v5586_v35 }
 0x3c5   : > { %4236 = vmatpush3.bf16.msra.mxu0 %v3154_v16  ;;  %4241 = vmatprep.mubr.msk.bf16.mxu0 %vm4571_vm5, %v5883_v46 }
 0x3c6   : > { %4237 = vmatprep.subr.bf16.mxu0 %v5883_v46 }
 0x3c9   : > { %4238 = vmatpush3.bf16.msra.mxu0 %v3153_v2 }
 0x3ca   : > { %4239 = vmatprep.subr.bf16.mxu0 %v5883_v46 }
 0x3cd   : > { %4240 = vmatpush3.bf16.msra.mxu0 %v3152_v10 }
 0x3ce   : > { %4260 = vmatprep.subr.mxu0 %v5883_v46 }
 0x3d0   : > { %4242 = vmatmul.mubr.msk.bf16.vlgmr.msra.gmra.mxu0 %vm3155_vm3, %v5586_v35 }
 0x3d1   : > { %4272 = vmatprep.mubr.msk.f32.mxu0 %vm4571_vm5, %v5883_v46 }
 0x46d   : > { %v4215_v3 = vpop.f32.mrf.mxu1 }
 0x46e   : > { %v5611_v22 = vadd.f32 %v4215_v3, %v3888_v61 }
 0x46f   : > { %v2824_v36 = vpop.f32.mrf.mxu1 }
 0x470   : > { %v3899_v40 = vmul.f32 -1.442695, %v5611_v22  ;;  %v5620_v48 = vadd.f32 %v3888_v61, %v2824_v36 }
 0x471   : > { %v4216_v21 = vpop.f32.mrf.mxu1 }
 0x472   : > { %v5606_v34 = vadd.f32 %v4216_v21, %v3888_v61  ;;  %v3897_v29 = vmul.f32 -1.442695, %v5620_v48 }
 0x473   : > { %v2827_v12 = vpop.f32.mrf.mxu1 }
 0x474   : > { %v5608_v24 = vadd.f32 %v3888_v61, %v2827_v12  ;;  %v3900_v15 = vmul.f32 -1.442695, %v5606_v34  ;;  %v3909_v12 = vld [vmem:[%s5823_s19] ss:$0 sm:$0xff] }
 0x476   : > { %v3898_v60 = vmul.f32 -1.442695, %v5608_v24 }
 0x478   : > { %4480 = vpow2.f32 %v3898_v60  ;;  %v4219_v26 = vpop.f32.mrf.mxu1 }
 0x479   : > { %v5614_v52 = vadd.f32 %v4219_v26, %v3888_v61  ;;  %4482 = vpow2.f32 %v3900_v15 }
 0x47a   : > { %v2840_v44 = vpop.f32.mrf.mxu1 }
 0x47b   : > { %v3903_v54 = vmul.f32 -1.442695, %v5614_v52  ;;  %v5617_v11 = vadd.f32 %v3888_v61, %v2840_v44 }
 0x47c   : > { %v4220_v7 = vpop.f32.mrf.mxu1 }
 0x47d   : > { %4484 = vpow2.f32 %v3903_v54  ;;  %v3901_v50 = vmul.f32 -1.442695, %v5617_v11  ;;  %v5623_v62 = vadd.f32 %v4220_v7, %v3888_v61 }
 0x47e   : > { %v2843_v9 = vpop.f32.mrf.mxu1 }
 0x47f   : > { %4486 = vpow2.f32 %v3901_v50  ;;  %v3904_v31 = vmul.f32 -1.442695, %v5623_v62  ;;  %v5626_v49 = vadd.f32 %v3888_v61, %v2843_v9 }
 0x480   : > { %4488 = vpow2.f32 %v3899_v40  ;;  %v4223_v30 = vpop.f32.mrf.mxu1 }
 0x481   : > { %4490 = vpow2.f32 %v3904_v31  ;;  %v3902_v38 = vmul.f32 -1.442695, %v5626_v49  ;;  %v5630_v5 = vadd.f32 %v4223_v30, %v3888_v61 }
 0x482   : > { %v2856_v58 = vpop.f32.mrf.mxu1 }
 0x483   : > { %4492 = vpow2.f32 %v3902_v38  ;;  %v3907_v45 = vmul.f32 -1.442695, %v5630_v5  ;;  %v5633_v17 = vadd.f32 %v3888_v61, %v2856_v58 }
 0x484   : > { %4494 = vpow2.f32 %v3897_v29  ;;  %v4224_v51 = vpop.f32.mrf.mxu1 }
 0x485   : > { %v4481_v19 = vpop.eup %4480  ;;  %4496 = vpow2.f32 %v3907_v45  ;;  %v3905_v18 = vmul.f32 -1.442695, %v5633_v17  ;;  %v5636_v14 = vadd.f32 %v4224_v51, %v3888_v61 }
 0x486   : > { %v2859_v1 = vpop.f32.mrf.mxu1  ;;  %v2908_v41 = vadd.f32 1.0, %v4481_v19  ;;  %v4483_v56 = vpop.eup %4482 }
 0x487   : > { %4498 = vpow2.f32 %v3905_v18  ;;  %v3908_v0 = vmul.f32 -1.442695, %v5636_v14  ;;  %v5639_v28 = vadd.f32 %v3888_v61, %v2859_v1  ;;  %v2910_v47 = vadd.f32 1.0, %v4483_v56 }
 0x489   : > { %4500 = vpow2.f32 %v3908_v0  ;;  %v3906_v57 = vmul.f32 -1.442695, %v5639_v28 }
 0x48a   : > { %v4485_v13 = vpop.eup %4484 }
 0x48b   : > { %v2913_v37 = vadd.f32 1.0, %v4485_v13  ;;  %4502 = vpow2.f32 %v3906_v57 }
 0x48c   : > { %v4487_v63 = vpop.eup %4486  ;;  %4504 = vrcp.f32 %v2908_v41 }
 0x48d   : > { %v4489_v27 = vpop.eup %4488  ;;  %4506 = vrcp.f32 %v2913_v37  ;;  %v2911_v20 = vadd.f32 1.0, %v4487_v63 }
 0x48e   : > { %v4491_v42 = vpop.eup %4490  ;;  %v2909_v59 = vadd.f32 1.0, %v4489_v27 }
 0x48f   : > { %4508 = vrcp.f32 %v2911_v20  ;;  %v2914_v39 = vadd.f32 1.0, %v4491_v42  ;;  %v5673_v42 = vld [vmem:[%s5063_s30 + $0x20] sm:$0xff] }
 0x490   : > { %v4493_v8 = vpop.eup %4492  ;;  %4510 = vrcp.f32 %v2910_v47 }
 0x491   : > { %v4495_v53 = vpop.eup %4494  ;;  %4512 = vrcp.f32 %v2914_v39  ;;  %v2912_v4 = vadd.f32 1.0, %v4493_v8 }
 0x492   : > { %v4497_v25 = vpop.eup %4496  ;;  %v2907_v23 = vadd.f32 1.0, %v4495_v53 }
 0x493   : > { %4514 = vrcp.f32 %v2912_v4  ;;  %v2917_v55 = vadd.f32 1.0, %v4497_v25  ;;  %v3193_v25 = vpop.f32.mrf.mxu0 }
 0x494   : > { %v4499_v16 = vpop.eup %4498  ;;  %4516 = vrcp.f32 %v2909_v59 }
 0x495   : > { %4518 = vrcp.f32 %v2917_v55  ;;  %v2915_v32 = vadd.f32 1.0, %v4499_v16  ;;  %v5679_v55 = vld [vmem:[%s5063_s30 + $0x28] sm:$0xff] }
 0x496   : > { %v4501_v33 = vpop.eup %4500 }
 0x497   : > { %4520 = vrcp.f32 %v2915_v32  ;;  %v2918_v2 = vadd.f32 1.0, %v4501_v33  ;;  %v4233_v33 = vpop.f32.mrf.mxu0 }
 0x498   : > { %v4503_v6 = vpop.eup %4502  ;;  %4522 = vrcp.f32 %v2907_v23  ;;  %v5683_v23 = vld [vmem:[%s5063_s30 + $0x8] sm:$0xff] }
 0x499   : > { %v4505_v10 = vpop.eup %4504  ;;  %4524 = vrcp.f32 %v2918_v2  ;;  %v2916_v3 = vadd.f32 1.0, %v4503_v6 }
 0x49a   : > { %v4507_v36 = vpop.eup %4506  ;;  %v2944_v15 = vmul.f32 %v4505_v10, %v5608_v24  ;;  %v3196_v10 = vpop.f32.mrf.mxu0 }
 0x49b   : > { %v2949_v21 = vmul.f32 %v4507_v36, %v5614_v52  ;;  %4526 = vrcp.f32 %v2916_v3  ;;  %v5688_v3 = vld [vmem:[%s5063_s30 + $0x18] sm:$0xff] }
 0x49c   : > { %v4509_v61 = vpop.eup %4508  ;;  %v2963_v30 = vmul.f32 %v3909_v12, %v2944_v15 }
 0x49d   : > { %v4511_v60 = vpop.eup %4510  ;;  %v2947_v26 = vmul.f32 %v4509_v61, %v5617_v11  ;;  %v5648_v44 = vmul.f32 %v3909_v12, %v2949_v21  ;;  %v4234_v21 = vpop.f32.mrf.mxu0 }
 0x49e   : > { %v4513_v54 = vpop.eup %4512  ;;  %v2946_v52 = vmul.f32 %v4511_v60, %v5606_v34 }
 0x49f   : > { %v2950_v40 = vmul.f32 %v4513_v54, %v5623_v62  ;;  %v2966_v7 = vmul.f32 %v3909_v12, %v2947_v26  ;;  %v3233_v60 = vpop.f32.mrf.mxu0  ;;  %v5693_v26 = vld [vmem:[%s5063_s30 + $0x10] sm:$0xff] }
 0x4a0   : > { %v4515_v50 = vpop.eup %4514  ;;  %v2965_v51 = vmul.f32 %v3909_v12, %v2946_v52  ;;  %v3385_v15 = vcombine.low %v3193_v25, %v3233_v60 }
 0x4a1   : > { %v4517_v9 = vpop.eup %4516  ;;  %v2948_v31 = vmul.f32 %v4515_v50, %v5626_v49  ;;  %v2986_v29 = vsel %vm2559_vm2, %v2966_v7, 0.0  ;;  %v5654_v38 = vmul.f32 %v3909_v12, %v2950_v40  ;;  %v2977_v49 = vsel %vm2559_vm2, %v2963_v30, 0.0  ;;  %v4243_v40 = vpop.f32.mrf.mxu0  ;;  %v3917_v30 = vld [vmem:[%s5826_s22] ss:$0 sm:$0xff] }
 0x4a2   : > { %v4519_v24 = vpop.eup %4518  ;;  %2987 = vadd.xlane.f32.xlu1 %v2986_v29  ;;  %v2945_v62 = vmul.f32 %v4517_v9, %v5611_v22  ;;  %v5698_v9 = vld [vmem:[%s5063_s30] sm:$0xff] }
 0x4a3   : > { %v2953_v11 = vmul.f32 %v4519_v24, %v5630_v5  ;;  %v2967_v58 = vmul.f32 %v3909_v12, %v2948_v31  ;;  %v3236_v52 = vpop.f32.mrf.mxu0 }
 0x4a4   : > { %v4521_v45 = vpop.eup %4520  ;;  %v2964_v13 = vmul.f32 %v3909_v12, %v2945_v62  ;;  %v2995_v62 = vsel %vm2559_vm2, %v5654_v38, 0.0  ;;  %v5887_v38 = vld [vmem:[#allocation17_spill] sm:$0xff] }
 0x4a5   : > { %v4523_v19 = vpop.eup %4522  ;;  %v2951_v34 = vmul.f32 %v4521_v45, %v5633_v17  ;;  %v2989_v18 = vsel %vm2559_vm2, %v2967_v58, 0.0  ;;  %v5661_v1 = vmul.f32 %v3909_v12, %v2953_v11  ;;  %v2983_v17 = vsel %vm2559_vm2, %v2965_v51, 0.0  ;;  %v4244_v29 = vpop.f32.mrf.mxu0 }
 0x4a6   : > { %v4525_v0 = vpop.eup %4524  ;;  %2990 = vadd.xlane.f32.xlu0 %v2989_v18  ;;  %2978 = vadd.xlane.f32.xlu1 %v2977_v49  ;;  %v2943_v57 = vmul.f32 %v4523_v19, %v5620_v48  ;;  %v2980_v47 = vsel %vm2559_vm2, %v2964_v13, 0.0  ;;  %v5669_v48 = vstv %s1031_s27  ;;  %v5885_v18 = vld [vmem:[#allocation11_spill] sm:$0xff] }
 0x4a7   : > { %v2954_v41 = vmul.f32 %v4525_v0, %v5636_v14  ;;  %v2970_v5 = vmul.f32 %v3909_v12, %v2951_v34  ;;  %v3004_v45 = vsel %vm2559_vm2, %v5661_v1, 0.0 }
 0x4a8   : > { %v4527_v56 = vpop.eup %4526  ;;  %v2962_v27 = vmul.f32 %v3909_v12, %v2943_v57 }
 0x4a9   : > { %v2952_v22 = vmul.f32 %v4527_v56, %v5639_v28  ;;  %v2973_v37 = vmul.f32 %v3909_v12, %v2954_v41  ;;  %v2998_v58 = vsel %vm2559_vm2, %v2970_v5, 0.0  ;;  %v5886_v41 = vld [vmem:[#allocation10_spill] sm:$0xff] }
 0x4aa   : > { %2984 = vadd.xlane.f32.xlu0 %v2983_v17  ;;  %v2974_v14 = vsel %vm2559_vm2, %v2962_v27, 0.0  ;;  %v3239_v17 = vunpack.c.l.bf16 %v5586_v35  ;;  %v4348_v27 = vld [vmem:[%s5825_s21] sm:$0xff]  }
 0x4ab   : > { %v2971_v63 = vmul.f32 %v3909_v12, %v2952_v22  ;;  %v3007_v24 = vsel %vm2559_vm2, %v2973_v37, 0.0  ;;  %v5888_v22 = vld [vmem:[#allocation8_spill] sm:$0xff]  ;;  %v5889_v37 = vld [vmem:[#allocation9_spill] sm:$0xff]  ;;  %v4540_v35 = vld [vmem:[%s4871_s20 + $0x4] sm:$0xf] }
 0x4ad   : > { %v3001_v11 = vsel %vm2559_vm2, %v2971_v63, 0.0 }
 0x4ae   : > { %2981 = vadd.xlane.f32.xlu0 %v2980_v47  ;;  %v4347_v47 = vld [vmem:[%s5825_s21 + $0x8] sm:$0xff]  }
 0x4b2   : > { %2975 = vadd.xlane.f32.xlu0 %v2974_v14  ;;  %v3387_v14 = vpack.c.bf16 %v3385_v15, %v3385_v15 }
 0x52b   : > { %v2988_v20 = vpop.xlane.xlu1 %2987 }
 0x52c   : > { %v3015_v28 = vadd.f32 %v5669_v48, %v2988_v20 }
 0x52e   : > { %v3069_v39 = vmul.f32 %v5673_v42, %v3015_v28 }
 0x52f   : > { %v2991_v8 = vpop.xlane.xlu0 %2990  ;;  %v2979_v59 = vpop.xlane.xlu1 %2978 }
 0x530   : > { %v3016_v53 = vadd.f32 %v5669_v48, %v2991_v8  ;;  %v3012_v4 = vadd.f32 %v5669_v48, %v2979_v59  ;;  %3099 = vperm.xlu0 %4322, %v3069_v39  }
 0x532   : > { %v3070_v16 = vmul.f32 %v5679_v55, %v3016_v53  ;;  %v3066_v32 = vmul.f32 %v5683_v23, %v3012_v4 }
 0x533   : > { %v2985_v2 = vpop.xlane.xlu0 %2984 }
 0x534   : > { %v3014_v6 = vadd.f32 %v5669_v48, %v2985_v2  ;;  %3104 = vperm.xlu1 %4321, %v3070_v16   ;;  %3084 = vperm.xlu0 %4322, %v3066_v32  }
 0x536   : > { %v3068_v36 = vmul.f32 %v5688_v3, %v3014_v6 }
 0x537   : > { %v2982_v61 = vpop.xlane.xlu0 %2981 }
 0x538   : > { %v3013_v12 = vadd.f32 %v5669_v48, %v2982_v61  ;;  %3094 = vperm.xlu1 %4321, %v3068_v36   ;;  %v4538_v36 = vld [vmem:[%s4754_s3] sm:$0xf] }
 0x53a   : > { %v3067_v54 = vmul.f32 %v5693_v26, %v3013_v12 }
 0x53b   : > { %v2976_v7 = vpop.xlane.xlu0 %2975 }
 0x53c   : > { %v3011_v50 = vadd.f32 %v5669_v48, %v2976_v7  ;;  %3089 = vperm.xlu1 %4321, %v3067_v54   ;;  %v2992_v54 = vsel %vm2559_vm2, %v5648_v44, 0.0  ;;  %v4350_v44 = vld [vmem:[%s5827_s23] sm:$0xff]  }
 0x53e   : > { %v3065_v31 = vmul.f32 %v5698_v9, %v3011_v50 }
 0x540   : > { %3079 = vperm.xlu1 %4321, %v3065_v31   ;;  %v4349_v31 = vld [vmem:[%s5827_s23 + $0x8] sm:$0xff]  }
 0x544   : > { %3458 = vrot.lane.b32.xlu1 %v3917_v30, %s4575_s29 }
 0x553   : > { %3008 = vadd.xlane.f32.xlu0 %v3007_v24 }
 0x557   : > { %3002 = vadd.xlane.f32.xlu0 %v3001_v11 }
 0x55b   : > { %2999 = vadd.xlane.f32.xlu0 %v2998_v58 }
 0x568   : > { %3005 = vadd.xlane.f32.xlu1 %v3004_v45 }
 0x56c   : > { %2996 = vadd.xlane.f32.xlu1 %v2995_v62 }
 0x5ab   : > { %v3100_v51 = vpop.permute.xlu0 %3099 }
 0x5ac   : > { %v3141_v49 = vmul.f32 %v3100_v51, %v5885_v18 }
 0x5af   : > { %v3105_v19 = vpop.permute.xlu1 %3104  ;;  %v3085_v1 = vpop.permute.xlu0 %3084 }
 0x5b0   : > { %v3142_v34 = vmul.f32 %v3105_v19, %v4984_v43  ;;  %v3138_v43 = vmul.f32 %v3085_v1, %v5888_v22  ;;  %v5894_v22 = vld [vmem:[#allocation14_spill] sm:$0xff] }
 0x5b2   : > { %4246 = vmatpush3.msra.mxu1 %v3142_v34 }
 0x5b3   : > { %4247 = vmatprep.subr.mxu1 %v5883_v46  ;;  %v3095_v0 = vpop.permute.xlu1 %3094 }
 0x5b4   : > { %v3140_v5 = vmul.f32 %v3095_v0, %v5886_v41  ;;  %4248 = vmatpush3.msra.mxu1 %v3141_v49  ;;  %v5892_v41 = vld [vmem:[#allocation16_spill] sm:$0xff] }
 0x5b5   : > { %4249 = vmatprep.subr.mxu1 %v5883_v46 }
 0x5b6   : > { %4250 = vmatpush3.msra.mxu1 %v3140_v5 }
 0x5b7   : > { %v3090_v56 = vpop.permute.xlu1 %3089  ;;  %4251 = vmatprep.subr.mxu1 %v5883_v46 }
 0x5b8   : > { %v3139_v57 = vmul.f32 %v3090_v56, %v5887_v38  ;;  %v5893_v56 = vld [vmem:[#allocation13_spill] sm:$0xff] }
 0x5ba   : > { %4252 = vmatpush3.msra.mxu1 %v3139_v57 }
 0x5bb   : > { %4253 = vmatprep.subr.mxu1 %v5883_v46  ;;  %v3080_v13 = vpop.permute.xlu1 %3079 }
 0x5bc   : > { %v3137_v63 = vmul.f32 %v3080_v13, %v5889_v37  ;;  %4254 = vmatpush3.msra.mxu1 %v3138_v43 }
 0x5bd   : > { %4255 = vmatprep.subr.mxu1 %v5883_v46 }
 0x5be   : > { %4256 = vmatpush3.msra.mxu1 %v3137_v63  ;;  %v5896_v63 = vld [vmem:[#allocation19_spill] sm:$0xff] }
 0x5bf   : > { %4275 = vmatprep.subr.bf16.mxu1 %v5883_v46  ;;  %4258 = vmatmul.mubr.msk.f32.vlgmr.msra.gmra.mxu1 %vm3155_vm3, %v3239_v17  ;;  %v3459_v32 = vpop.permute.xlu1 %3458 }
 0x5c0   : > { %4276 = vmatpush3.bf16.msra.mxu1 %v4347_v47  ;;  %4279 = vmatprep.mubr.msk.bf16.mxu1 %vm4571_vm5, %v5883_v46 }
 0x5c1   : > { %4277 = vmatprep.subr.bf16.mxu1 %v5883_v46 }
 0x5c4   : > { %4278 = vmatpush3.bf16.msra.mxu1 %v4348_v27  ;;  %v3919_v27 = vld [vmem:[%s5828_s24] ss:$0 sm:$0xff] }
 0x5c5   : > { %4283 = vmatprep.subr.bf16.mxu1 %v5883_v46 }
 0x5c7   : > { %4280 = vmatmul.mubr.msk.bf16.vlgmr.msra.gmra.mxu1 %vm2559_vm2, %v3387_v14 }
 0x5c8   : > { %4287 = vmatprep.mubr.msk.bf16.mxu1 %vm4571_vm5, %v5883_v46  ;;  %vm3549_vm5 = vcmask 19456   ;;  %4284 = vmatpush3.bf16.msra.mxu1 %v4349_v31 }
 0x5c9   : > { %4285 = vmatprep.subr.bf16.mxu1 %v5883_v46 }
 0x5cc   : > { %4286 = vmatpush3.bf16.msra.mxu1 %v4350_v44 }
 0x5dc   : > { %v3009_v20 = vpop.xlane.xlu0 %3008 }
 0x5dd   : > { %v3022_v28 = vadd.f32 %v5669_v48, %v3009_v20 }
 0x5df   : > { %v3076_v39 = vmul.f32 %v5679_v55, %v3022_v28  ;;  %v5890_v55 = vld [vmem:[#allocation15_spill] sm:$0xff] }
 0x5e0   : > { %v3003_v8 = vpop.xlane.xlu0 %3002 }
 0x5e1   : > { %v3020_v59 = vadd.f32 %v5669_v48, %v3003_v8  ;;  %3134 = vperm.xlu1 %4321, %v3076_v39   ;;  %v4539_v39 = vld [vmem:[%s4871_s20] sm:$0xf] }
 0x5e3   : > { %v3074_v53 = vmul.f32 %v5688_v3, %v3020_v59 }
 0x5e4   : > { %v3000_v4 = vpop.xlane.xlu0 %2999 }
 0x5e5   : > { %v3019_v25 = vadd.f32 %v5669_v48, %v3000_v4  ;;  %3124 = vperm.xlu1 %4321, %v3074_v53  }
 0x5e7   : > { %v3073_v16 = vmul.f32 %v5693_v26, %v3019_v25  ;;  %v5897_v25 = vld [vmem:[#allocation7_spill] sm:$0xff] }
 0x5e9   : > { %3119 = vperm.xlu1 %4321, %v3073_v16  }
 0x5f1   : > { %v3006_v33 = vpop.xlane.xlu1 %3005 }
 0x5f2   : > { %v3021_v40 = vadd.f32 %v5669_v48, %v3006_v33 }
 0x5f4   : > { %v3075_v7 = vmul.f32 %v5673_v42, %v3021_v40  ;;  %v5891_v42 = vld [vmem:[#allocation12_spill] sm:$0xff] }
 0x5f5   : > { %v2997_v2 = vpop.xlane.xlu1 %2996 }
 0x5f6   : > { %v3018_v50 = vadd.f32 %v5669_v48, %v2997_v2 }
 0x5f8   : > { %v3072_v52 = vmul.f32 %v5683_v23, %v3018_v50 }
 0x65c   : > { %v3135_v6 = vpop.permute.xlu1 %3134 }
 0x65d   : > { %v3148_v10 = vmul.f32 %v3135_v6, %v5890_v55 }
 0x65f   : > { %4261 = vmatpush3.msra.mxu0 %v3148_v10 }
 0x660   : > { %4262 = vmatprep.subr.mxu0 %v5883_v46  ;;  %v3125_v49 = vpop.permute.xlu1 %3124 }
 0x661   : > { %v3146_v38 = vmul.f32 %v3125_v49, %v5893_v56 }
 0x664   : > { %v3120_v1 = vpop.permute.xlu1 %3119 }
 0x665   : > { %v3145_v43 = vmul.f32 %v3120_v1, %v5894_v22 }
 0x67f   : > { %v3309_v3 = vpop.f32.mrf.mxu1 }
 0x680   : > { %v3547_v21 = vadd.f32 %v4538_v36, %v3309_v3 }
 0x681   : > { %v4259_v61 = vpop.f32.mrf.mxu1 }
 0x682   : > { %3550 = vst.msk [vmem:[%s5753_s7] sm:$0xf] %vm3549_vm5, %v3547_v21 }
 0x687   : > { %v3441_v12 = vpop.f32.mrf.mxu1 }
 0x688   : > { %3448 = vrot.lane.b32.xlu0 %v3441_v12, %s4575_s29 }
 0x689   : > { %v4281_v60 = vpop.f32.mrf.mxu1 }
 0x68b   : > { %v3444_v15 = vpop.f32.mrf.mxu1 }
 0x68d   : > { %v4282_v26 = vpop.f32.mrf.mxu1 }
 0x6a7   : > { %2993 = vadd.xlane.f32.xlu0 %v2992_v54 }
 0x6bd   : > { %3129 = vperm.xlu0 %4322, %v3075_v7  }
 0x6c1   : > { %3114 = vperm.xlu0 %4322, %v3072_v52  }
 0x6fa   : > { %v3449_v29 = vpop.permute.xlu0 %3448 }
 0x6fb   : > { %v3451_v30 = vadd.f32 %v3449_v29, %v5891_v42 }
 0x6fd   : > { %v3461_v24 = vadd.f32 %v3459_v32, %v3451_v30 }
 0x6ff   : > { %v3918_v11 = vmul.f32 -1.442695, %v3461_v24 }
 0x701   : > { %4528 = vpow2.f32 %v3918_v11 }
 0x70e   : > { %v4529_v23 = vpop.eup %4528 }
 0x70f   : > { %v3465_v58 = vadd.f32 1.0, %v4529_v23 }
 0x711   : > { %4530 = vrcp.f32 %v3465_v58 }
 0x71e   : > { %v4531_v45 = vpop.eup %4530 }
 0x71f   : > { %v3468_v62 = vmul.f32 %v4531_v45, %v3461_v24 }
 0x721   : > { %v3469_v51 = vpack.c.bf16 %v3468_v62, %v3468_v62 }
 0x723   : > { %3482 = vrot.lane.b32.xlu0 %v3469_v51, %s4575_s29 }
 0x730   : > { %v2994_v19 = vpop.xlane.xlu0 %2993 }
 0x731   : > { %v3017_v34 = vadd.f32 %v5669_v48, %v2994_v19  ;;  %v5895_v48 = vld [vmem:[#allocation18_spill] sm:$0xff] }
 0x733   : > { %v3071_v18 = vmul.f32 %v5698_v9, %v3017_v34 }
 0x735   : > { %3109 = vperm.xlu1 %4321, %v3071_v18  }
 0x738   : > { %v3130_v0 = vpop.permute.xlu0 %3129 }
 0x739   : > { %v3147_v5 = vmul.f32 %v3130_v0, %v5892_v41 }
 0x73b   : > { %4263 = vmatpush3.msra.mxu0 %v3147_v5 }
 0x73c   : > { %v3115_v57 = vpop.permute.xlu0 %3114  ;;  %4264 = vmatprep.subr.mxu0 %v5883_v46 }
 0x73d   : > { %4265 = vmatpush3.msra.mxu0 %v3146_v38  ;;  %v3144_v9 = vmul.f32 %v3115_v57, %v5895_v48 }
 0x73e   : > { %4266 = vmatprep.subr.mxu0 %v5883_v46 }
 0x73f   : > { %4267 = vmatpush3.msra.mxu0 %v3145_v43 }
 0x740   : > { %4268 = vmatprep.subr.mxu0 %v5883_v46 }
 0x741   : > { %4269 = vmatpush3.msra.mxu0 %v3144_v9 }
 0x742   : > { %4270 = vmatprep.subr.mxu0 %v5883_v46 }
 0x795   : > { %v3483_v13 = vpop.permute.xlu0 %3482 }
 0x796   : > { %4288 = vmatmul.mubr.msk.bf16.vlgmr.msra.gmra.mxu1 %vm2559_vm2, %v3483_v13 }
 0x7b0   : > { %v3110_v37 = vpop.permute.xlu1 %3109 }
 0x7b1   : > { %v3143_v47 = vmul.f32 %v3110_v37, %v5896_v63 }
 0x7b3   : > { %4271 = vmatpush3.msra.mxu0 %v3143_v47 }
 0x7b4   : > { %4273 = vmatmul.mubr.msk.f32.vlgmr.msra.gmra.mxu0 %vm3155_vm3, %v3239_v17 }
 0x856   : > { %v3533_v14 = vpop.f32.mrf.mxu1 }
 0x857   : > { %v3534_v20 = vadd.f32 %v3919_v27, %v3533_v14 }
 0x858   : > { %v4289_v46 = vpop.f32.mrf.mxu1 }
 0x859   : > { %v3540_v28 = vcombine.high %v3534_v20, %v3534_v20  ;;  %v3542_v8 = vadd.f32 %v4539_v39, %v3534_v20 }
 0x85a   : > { %v3536_v59 = vpop.f32.mrf.mxu1 }
 0x85b   : > { %v3543_v53 = vadd.f32 %v4540_v35, %v3540_v28  ;;  %3545 = vst.msk [vmem:[%s990_s28] sm:$0xf] %vm3544_vm4, %v3542_v8 }
 0x85c   : > { %v4290_v17 = vpop.f32.mrf.mxu1 }
 0x85d   : > { %3546 = vst.msk [vmem:[%s990_s28 + $0x4] sm:$0xf] %vm3544_vm4, %v3543_v53 }
 0x874   : > { %v3379_v4 = vpop.f32.mrf.mxu0 }
 0x875   : > { %v3548_v16 = vadd.f32 %v3379_v4, %v5897_v25 }
 0x876   : > { %v4274_v32 = vpop.f32.mrf.mxu0 }
 0x877   : > { %3551 = vst.msk [vmem:[%s5753_s7 + $0x4] sm:$0xf] %vm3549_vm5, %v3548_v16 }
 0x878 PF: > { %s5898_s0 = sld [smem:[#allocation6_spill]] }
 0x87e   : > { %s39_s7 = sadd.s32 1, %s5898_s0  }
 0x87f   : > { %p36_p1 = scmp.ge.s32.totalorder %s39_s7, 4  }
 0x881   :  { %38 = sbr.rel (!%p36_p1) target bundleno = 14 (0xe), region = 194 }
 0x886   :  { %3589 = vsyncpa [#allocation4], 1 }
 0x887   :  { %3591 = vsyncpa [#allocation4 + $0x1], 1 }

</bundles_post_ra>
